<compile_context>
chip_gen: v5e
topology: v5e:2x2
jax: 0.10.0
libtpu: 0.0.40
codegen_flags: <defaults>
</compile_context>

<pallas_src>
import functools

import jax
import jax.numpy as jnp
from jax.experimental import pallas as pl
from jax.experimental.pallas import tpu as pltpu

LN_EPS = 1e-5  # torch.nn.LayerNorm default


def _layernorm(x, gamma, beta):
    # Single pass over x: mean and mean-of-squares together; biased var (torch default).
    mu = jnp.mean(x, axis=-1, keepdims=True)
    msq = jnp.mean(x * x, axis=-1, keepdims=True)
    var = msq - mu * mu
    return (x - mu) * jax.lax.rsqrt(var + LN_EPS) * gamma + beta


def transformer_layer_kernel(x_ref,
                             ln1_g_ref, ln1_b_ref, wqkv_ref, wout_ref, bout_ref,
                             ln2_g_ref, ln2_b_ref, w1_ref, b1_ref, w2_ref, b2_ref,
                             o_ref,
                             *, seq, heads, dim_head, scale, compute_dtype):
    # Grid = (batch, depth): one grid step == one Transformer layer applied to one batch
    # element's full sequence (N, D).  The output block is resident across the depth axis and
    # carries the activations from layer to layer (single HBM round-trip for activations).
    l = pl.program_id(1)
    inner = heads * dim_head

    # Layer 0: load the input activations into the resident output block (carried across layers).
    @pl.when(l == 0)
    def _():
        o_ref[...] = x_ref[...]

    x = o_ref[...].astype(jnp.float32)                               # (N, D) f32 carry

    # ---------------- Residual(PreNorm(Attention_1)) ----------------
    xn = _layernorm(x, ln1_g_ref[0], ln1_b_ref[0])
    # Weights are pre-transposed host-side to (in, out): plain x @ W, bf16 operands, f32 accum.
    qkv = jnp.dot(xn.astype(compute_dtype), wqkv_ref[0],
                  preferred_element_type=jnp.float32)                # (N, 3*inner) f32

    def heads_major(t):
        # (N, inner) -> (heads, N, dim_head): one minor-dim split + one major-dim swap,
        # instead of per-(batch,head) lane-sparse slices + stacks.
        return jnp.swapaxes(t.reshape(seq, heads, dim_head), 0, 1)

    q = heads_major(qkv[:, :inner] * scale).astype(compute_dtype)    # fold softmax scale into q
    k = heads_major(qkv[:, inner:2 * inner]).astype(compute_dtype)
    v = heads_major(qkv[:, 2 * inner:]).astype(compute_dtype)

    # Single batched contraction over all heads -- no per-head matmul loop.
    dots = jnp.einsum('hnd,hmd->hnm', q, k, preferred_element_type=jnp.float32)
    dots = dots - jnp.max(dots, axis=-1, keepdims=True)              # stable softmax
    e = jnp.exp(dots)
    attn = e * pl.reciprocal(jnp.sum(e, axis=-1, keepdims=True), approx=True)
    ctx = jnp.einsum('hnm,hmd->hnd', attn.astype(compute_dtype), v,
                     preferred_element_type=jnp.float32)             # (heads, N, dim_head)

    # 'h n d -> n (h d)': regroup context back to (N, inner) with one swap + one merge.
    ctx = jnp.swapaxes(ctx, 0, 1).reshape(seq, inner)

    attn_out = jnp.dot(ctx.astype(compute_dtype), wout_ref[0],
                       preferred_element_type=jnp.float32) + bout_ref[0]
    x = x + attn_out                                                 # Residual

    # ---------------- Residual(PreNorm(FeedForward)) ----------------
    xn = _layernorm(x, ln2_g_ref[0], ln2_b_ref[0])
    h = jnp.dot(xn.astype(compute_dtype), w1_ref[0],
                preferred_element_type=jnp.float32) + b1_ref[0]
    h = 0.5 * h * (1.0 + jax.lax.erf(h * 0.7071067811865476))        # exact GELU (torch default)
    y = jnp.dot(h.astype(compute_dtype), w2_ref[0],
                preferred_element_type=jnp.float32) + b2_ref[0]
    x = x + y                                                        # Residual

    o_ref[...] = x.astype(o_ref.dtype)


def transformer_forward(x, params, *, heads, dim_head, compute_dtype=jnp.bfloat16):
    """x: (B, N, D) f32.  params: depth-stacked tensors in torch nn.Linear (out, in) layout.

    compute_dtype: dtype of MXU operands (bf16 default; pass jnp.float32 for exact parity).
    """
    B, N, D = x.shape
    depth = params["w_qkv"].shape[0]
    inner = heads * dim_head
    mlp_dim = params["w1"].shape[1]
    scale = D ** (-0.5)  # NOTE: Attention_1 scales by dim**-0.5 (not dim_head**-0.5), per the spec

    # Pre-transpose nn.Linear weights ONCE, host side, to (in, out) and cast to the MXU-native
    # compute dtype: kernel does x @ W directly (no in-kernel transpose), halves weight DMA bytes.
    wqkv_t = jnp.swapaxes(params["w_qkv"], 1, 2).astype(compute_dtype)   # (depth, D, 3*inner)
    wout_t = jnp.swapaxes(params["w_out"], 1, 2).astype(compute_dtype)   # (depth, inner, D)
    w1_t = jnp.swapaxes(params["w1"], 1, 2).astype(compute_dtype)        # (depth, D, mlp_dim)
    w2_t = jnp.swapaxes(params["w2"], 1, 2).astype(compute_dtype)        # (depth, mlp_dim, D)

    x2 = x.reshape(B * N, D)

    def per_layer(shape):
        # Weight blocks indexed only by the depth axis -> default double-buffering prefetches the
        # NEXT layer's weights while the current layer computes.
        return pl.BlockSpec((1,) + shape, lambda b, l: (l, 0, 0))

    kernel = functools.partial(transformer_layer_kernel, seq=N, heads=heads,
                               dim_head=dim_head, scale=scale, compute_dtype=compute_dtype)
    out = pl.pallas_call(
        kernel,
        out_shape=jax.ShapeDtypeStruct((B * N, D), x.dtype),
        grid=(B, depth),
        in_specs=[
            # x: one batch element per block; only read at layer 0 of each batch block.
            pl.BlockSpec((N, D), lambda b, l: (b, 0)),
            per_layer((1, D)),            # ln1 gamma
            per_layer((1, D)),            # ln1 beta
            per_layer((D, 3 * inner)),    # to_qkv weight (pre-transposed, bias=False)
            per_layer((inner, D)),        # to_out weight (pre-transposed)
            per_layer((1, D)),            # to_out bias (f32)
            per_layer((1, D)),            # ln2 gamma
            per_layer((1, D)),            # ln2 beta
            per_layer((D, mlp_dim)),      # fc1 weight (pre-transposed)
            per_layer((1, mlp_dim)),      # fc1 bias (f32)
            per_layer((mlp_dim, D)),      # fc2 weight (pre-transposed)
            per_layer((1, D)),            # fc2 bias (f32)
        ],
        out_specs=pl.BlockSpec((N, D), lambda b, l: (b, 0)),   # resident carry across depth
        compiler_params=pltpu.CompilerParams(
            dimension_semantics=("parallel", "arbitrary"),     # batch -> megacore, depth -> carry
            vmem_limit_bytes=64 * 1024 * 1024,                 # re-derive per generation if needed
        ),
    )(x2,
      params["ln1_g"], params["ln1_b"], wqkv_t, wout_t, params["b_out"],
      params["ln2_g"], params["ln2_b"], w1_t, params["b1"], w2_t, params["b2"])
    return out.reshape(B, N, D)


def init_params(key, *, dim, depth, heads, dim_head, mlp_dim):
    inner = heads * dim_head
    ks = jax.random.split(key, 6)

    def w(k, shape):
        return 0.05 * jax.random.normal(k, (depth,) + shape, jnp.float32)

    return {
        "ln1_g": jnp.ones((depth, 1, dim), jnp.float32),
        "ln1_b": jnp.zeros((depth, 1, dim), jnp.float32),
        "w_qkv": w(ks[0], (3 * inner, dim)),     # torch nn.Linear layout (out, in)
        "w_out": w(ks[1], (dim, inner)),
        "b_out": w(ks[2], (1, dim)),
        "ln2_g": jnp.ones((depth, 1, dim), jnp.float32),
        "ln2_b": jnp.zeros((depth, 1, dim), jnp.float32),
        "w1":    w(ks[3], (mlp_dim, dim)),
        "b1":    w(ks[4], (1, mlp_dim)),
        "w2":    w(ks[5], (dim, mlp_dim)),
        "b2":    jnp.zeros((depth, 1, dim), jnp.float32),
    }


if __name__ == "__main__":
    # Small config consistent with Transformer(dim, depth, heads, dim_head, mlp_dim, dropout=0.0)
    B, N = 2, 8
    dim, depth, heads, dim_head, mlp_dim = 32, 2, 4, 8, 64   # dropout = 0.0 -> identity

    key = jax.random.PRNGKey(0)
    kx, kp = jax.random.split(key)
    x = jax.random.normal(kx, (B, N, dim), jnp.float32)
    params = init_params(kp, dim=dim, depth=depth, heads=heads,
                         dim_head=dim_head, mlp_dim=mlp_dim)

    y = transformer_forward(x, params, heads=heads, dim_head=dim_head)
    y = jax.block_until_ready(y)
    assert y.shape == (B, N, dim) and y.dtype == jnp.float32
    print("KERNEL_OK")
</pallas_src>

<mosaic_0001>
module attributes {stable_mosaic.version = 11 : i64} {
  func.func @transformer_layer_kernel(%arg0: i32, %arg1: i32, %arg2: memref<8x32xf32, #tpu.memory_space<vmem>>, %arg3: memref<1x1x32xf32, #tpu.memory_space<vmem>>, %arg4: memref<1x1x32xf32, #tpu.memory_space<vmem>>, %arg5: memref<1x32x96xbf16, #tpu.memory_space<vmem>>, %arg6: memref<1x32x32xbf16, #tpu.memory_space<vmem>>, %arg7: memref<1x1x32xf32, #tpu.memory_space<vmem>>, %arg8: memref<1x1x32xf32, #tpu.memory_space<vmem>>, %arg9: memref<1x1x32xf32, #tpu.memory_space<vmem>>, %arg10: memref<1x32x64xbf16, #tpu.memory_space<vmem>>, %arg11: memref<1x1x64xf32, #tpu.memory_space<vmem>>, %arg12: memref<1x64x32xbf16, #tpu.memory_space<vmem>>, %arg13: memref<1x1x32xf32, #tpu.memory_space<vmem>>, %arg14: memref<8x32xf32, #tpu.memory_space<vmem>>) attributes {dimension_semantics = [#tpu.dimension_semantics<parallel>, #tpu.dimension_semantics<arbitrary>], iteration_bounds = array<i64: 2, 2>, scalar_prefetch = 0 : i64, scratch_operands = 0 : i64, tpu.core_type = #tpu.core_type<tc>, window_params = [{transform_indices = @transform_0, window_bounds = array<i64: 8, 32>}, {transform_indices = @transform_1, window_bounds = array<i64: 1, 1, 32>}, {transform_indices = @transform_2, window_bounds = array<i64: 1, 1, 32>}, {transform_indices = @transform_3, window_bounds = array<i64: 1, 32, 96>}, {transform_indices = @transform_4, window_bounds = array<i64: 1, 32, 32>}, {transform_indices = @transform_5, window_bounds = array<i64: 1, 1, 32>}, {transform_indices = @transform_6, window_bounds = array<i64: 1, 1, 32>}, {transform_indices = @transform_7, window_bounds = array<i64: 1, 1, 32>}, {transform_indices = @transform_8, window_bounds = array<i64: 1, 32, 64>}, {transform_indices = @transform_9, window_bounds = array<i64: 1, 1, 64>}, {transform_indices = @transform_10, window_bounds = array<i64: 1, 64, 32>}, {transform_indices = @transform_11, window_bounds = array<i64: 1, 1, 32>}, {transform_indices = @transform_12, window_bounds = array<i64: 8, 32>}]} {
    %c0_i32 = arith.constant 0 : i32
    %0 = arith.cmpi eq, %arg1, %c0_i32 : i32
    %1 = arith.extui %0 : i1 to i32
    %c0_i32_0 = arith.constant 0 : i32
    %2 = arith.cmpi ne, %1, %c0_i32_0 : i32
    scf.if %2 {
      %c0_58 = arith.constant 0 : index
      %c0_59 = arith.constant 0 : index
      %124 = vector.load %arg2[%c0_58, %c0_59] : memref<8x32xf32, #tpu.memory_space<vmem>>, vector<8x32xf32>
      %c0_60 = arith.constant 0 : index
      %c0_61 = arith.constant 0 : index
      %125 = vector.load %arg14[%c0_60, %c0_61] : memref<8x32xf32, #tpu.memory_space<vmem>>, vector<8x32xf32>
      tpu.vector_store %arg14[%c0_60, %c0_61], %124 {strides = array<i32>} : memref<8x32xf32, #tpu.memory_space<vmem>>, vector<8x32xf32>,
    } else {
    }
    %c0 = arith.constant 0 : index
    %c0_1 = arith.constant 0 : index
    %3 = vector.load %arg14[%c0, %c0_1] : memref<8x32xf32, #tpu.memory_space<vmem>>, vector<8x32xf32>
    %c0_2 = arith.constant 0 : index
    %c0_3 = arith.constant 0 : index
    %c0_4 = arith.constant 0 : index
    %4 = vector.load %arg3[%c0_2, %c0_3, %c0_4] : memref<1x1x32xf32, #tpu.memory_space<vmem>>, vector<1x1x32xf32>
    %5 = vector.shape_cast %4 : vector<1x1x32xf32> to vector<1x32xf32>
    %c0_5 = arith.constant 0 : index
    %c0_6 = arith.constant 0 : index
    %c0_7 = arith.constant 0 : index
    %6 = vector.load %arg4[%c0_5, %c0_6, %c0_7] : memref<1x1x32xf32, #tpu.memory_space<vmem>>, vector<1x1x32xf32>
    %7 = vector.shape_cast %6 : vector<1x1x32xf32> to vector<1x32xf32>
    %cst = arith.constant dense<0.000000e+00> : vector<8xf32>
    %8 = vector.multi_reduction <add>, %3, %cst [1] : vector<8x32xf32> to vector<8xf32>
    %9 = vector.shape_cast %8 : vector<8xf32> to vector<8x1xf32>
    %cst_8 = arith.constant 3.200000e+01 : f32
    %10 = vector.broadcast %cst_8 : f32 to vector<8x1xf32>
    %11 = arith.divf %9, %10 : vector<8x1xf32>
    %12 = arith.mulf %3, %3 : vector<8x32xf32>
    %cst_9 = arith.constant dense<0.000000e+00> : vector<8xf32>
    %13 = vector.multi_reduction <add>, %12, %cst_9 [1] : vector<8x32xf32> to vector<8xf32>
    %14 = vector.shape_cast %13 : vector<8xf32> to vector<8x1xf32>
    %cst_10 = arith.constant 3.200000e+01 : f32
    %15 = vector.broadcast %cst_10 : f32 to vector<8x1xf32>
    %16 = arith.divf %14, %15 : vector<8x1xf32>
    %17 = arith.mulf %11, %11 : vector<8x1xf32>
    %18 = arith.subf %16, %17 : vector<8x1xf32>
    %19 = vector.broadcast %11 : vector<8x1xf32> to vector<8x32xf32>
    %20 = arith.subf %3, %19 : vector<8x32xf32>
    %cst_11 = arith.constant 9.99999974E-6 : f32
    %21 = vector.broadcast %cst_11 : f32 to vector<8x1xf32>
    %22 = arith.addf %18, %21 : vector<8x1xf32>
    %23 = math.rsqrt %22 : vector<8x1xf32>
    %24 = vector.broadcast %23 : vector<8x1xf32> to vector<8x32xf32>
    %25 = arith.mulf %20, %24 : vector<8x32xf32>
    %26 = vector.broadcast %5 : vector<1x32xf32> to vector<8x32xf32>
    %27 = arith.mulf %25, %26 : vector<8x32xf32>
    %28 = vector.broadcast %7 : vector<1x32xf32> to vector<8x32xf32>
    %29 = arith.addf %27, %28 : vector<8x32xf32>
    %30 = arith.truncf %29 : vector<8x32xf32> to vector<8x32xbf16>
    %c0_12 = arith.constant 0 : index
    %c0_13 = arith.constant 0 : index
    %c0_14 = arith.constant 0 : index
    %31 = vector.load %arg5[%c0_12, %c0_13, %c0_14] : memref<1x32x96xbf16, #tpu.memory_space<vmem>>, vector<1x32x96xbf16>
    %32 = vector.shape_cast %31 : vector<1x32x96xbf16> to vector<32x96xbf16>
    %cst_15 = arith.constant dense<0.000000e+00> : vector<8x96xf32>
    %33 = tpu.matmul %30, %32, %cst_15 {dimension_numbers = #tpu.dot_dimension_numbers<[1], [0], [0], [1], [0, 0, 1, 1], [], []>} : vector<8x32xbf16>, vector<32x96xbf16>, vector<8x96xf32> -> vector<8x96xf32>
    %34 = vector.extract_strided_slice %33 {offsets = [0, 0], sizes = [8, 32], strides = [1, 1]} : vector<8x96xf32> to vector<8x32xf32>
    %cst_16 = arith.constant 0.176776692 : f32
    %35 = vector.broadcast %cst_16 : f32 to vector<8x32xf32>
    %36 = arith.mulf %34, %35 : vector<8x32xf32>
    %37 = vector.shape_cast %36 : vector<8x32xf32> to vector<8x4x8xf32>
    %38 = tpu.transpose %37, [1, 0, 2] : vector<8x4x8xf32> -> vector<4x8x8xf32>
    %39 = arith.truncf %38 : vector<4x8x8xf32> to vector<4x8x8xbf16>
    %40 = vector.extract_strided_slice %33 {offsets = [0, 32], sizes = [8, 32], strides = [1, 1]} : vector<8x96xf32> to vector<8x32xf32>
    %41 = vector.shape_cast %40 : vector<8x32xf32> to vector<8x4x8xf32>
    %42 = tpu.transpose %41, [1, 0, 2] : vector<8x4x8xf32> -> vector<4x8x8xf32>
    %43 = arith.truncf %42 : vector<4x8x8xf32> to vector<4x8x8xbf16>
    %44 = vector.extract_strided_slice %33 {offsets = [0, 64], sizes = [8, 32], strides = [1, 1]} : vector<8x96xf32> to vector<8x32xf32>
    %45 = vector.shape_cast %44 : vector<8x32xf32> to vector<8x4x8xf32>
    %46 = tpu.transpose %45, [1, 0, 2] : vector<8x4x8xf32> -> vector<4x8x8xf32>
    %47 = arith.truncf %46 : vector<4x8x8xf32> to vector<4x8x8xbf16>
    "tpu.trace_start"() <{level = 10 : i32, message = "hnd,hmd->hnm"}> : () -> ()
    %cst_17 = arith.constant dense<0.000000e+00> : vector<4x8x8xf32>
    %48 = tpu.matmul %39, %43, %cst_17 {dimension_numbers = #tpu.dot_dimension_numbers<[2], [2], [1], [1], [0, 0, 0, 1, 1, 1], [0], [0]>} : vector<4x8x8xbf16>, vector<4x8x8xbf16>, vector<4x8x8xf32> -> vector<4x8x8xf32>
    "tpu.trace_stop"() : () -> ()
    %cst_18 = arith.constant dense<0xFF800000> : vector<4x8xf32>
    %49 = vector.multi_reduction <maximumf>, %48, %cst_18 [2] : vector<4x8x8xf32> to vector<4x8xf32>
    %50 = vector.shape_cast %49 : vector<4x8xf32> to vector<4x8x1xf32>
    %51 = vector.broadcast %50 : vector<4x8x1xf32> to vector<4x8x8xf32>
    %52 = arith.subf %48, %51 : vector<4x8x8xf32>
    %53 = math.exp %52 : vector<4x8x8xf32>
    %cst_19 = arith.constant dense<0.000000e+00> : vector<4x8xf32>
    %54 = vector.multi_reduction <add>, %53, %cst_19 [2] : vector<4x8x8xf32> to vector<4x8xf32>
    %55 = vector.shape_cast %54 : vector<4x8xf32> to vector<4x8x1xf32>
    %56 = tpu.reciprocal %55 {approx = true} : vector<4x8x1xf32> -> vector<4x8x1xf32>
    %57 = vector.broadcast %56 : vector<4x8x1xf32> to vector<4x8x8xf32>
    %58 = arith.mulf %53, %57 : vector<4x8x8xf32>
    %59 = arith.truncf %58 : vector<4x8x8xf32> to vector<4x8x8xbf16>
    "tpu.trace_start"() <{level = 10 : i32, message = "hnm,hmd->hnd"}> : () -> ()
    %cst_20 = arith.constant dense<0.000000e+00> : vector<4x8x8xf32>
    %60 = tpu.matmul %59, %47, %cst_20 {dimension_numbers = #tpu.dot_dimension_numbers<[2], [1], [1], [2], [0, 0, 0, 1, 1, 2], [0], [0]>} : vector<4x8x8xbf16>, vector<4x8x8xbf16>, vector<4x8x8xf32> -> vector<4x8x8xf32>
    "tpu.trace_stop"() : () -> ()
    %61 = tpu.transpose %60, [1, 0, 2] : vector<4x8x8xf32> -> vector<8x4x8xf32>
    %62 = vector.shape_cast %61 : vector<8x4x8xf32> to vector<8x32xf32>
    %63 = arith.truncf %62 : vector<8x32xf32> to vector<8x32xbf16>
    %c0_21 = arith.constant 0 : index
    %c0_22 = arith.constant 0 : index
    %c0_23 = arith.constant 0 : index
    %64 = vector.load %arg6[%c0_21, %c0_22, %c0_23] : memref<1x32x32xbf16, #tpu.memory_space<vmem>>, vector<1x32x32xbf16>
    %65 = vector.shape_cast %64 : vector<1x32x32xbf16> to vector<32x32xbf16>
    %cst_24 = arith.constant dense<0.000000e+00> : vector<8x32xf32>
    %66 = tpu.matmul %63, %65, %cst_24 {dimension_numbers = #tpu.dot_dimension_numbers<[1], [0], [0], [1], [0, 0, 1, 1], [], []>} : vector<8x32xbf16>, vector<32x32xbf16>, vector<8x32xf32> -> vector<8x32xf32>
    %c0_25 = arith.constant 0 : index
    %c0_26 = arith.constant 0 : index
    %c0_27 = arith.constant 0 : index
    %67 = vector.load %arg7[%c0_25, %c0_26, %c0_27] : memref<1x1x32xf32, #tpu.memory_space<vmem>>, vector<1x1x32xf32>
    %68 = vector.shape_cast %67 : vector<1x1x32xf32> to vector<1x32xf32>
    %69 = vector.broadcast %68 : vector<1x32xf32> to vector<8x32xf32>
    %70 = arith.addf %66, %69 : vector<8x32xf32>
    %71 = arith.addf %3, %70 : vector<8x32xf32>
    %c0_28 = arith.constant 0 : index
    %c0_29 = arith.constant 0 : index
    %c0_30 = arith.constant 0 : index
    %72 = vector.load %arg8[%c0_28, %c0_29, %c0_30] : memref<1x1x32xf32, #tpu.memory_space<vmem>>, vector<1x1x32xf32>
    %73 = vector.shape_cast %72 : vector<1x1x32xf32> to vector<1x32xf32>
    %c0_31 = arith.constant 0 : index
    %c0_32 = arith.constant 0 : index
    %c0_33 = arith.constant 0 : index
    %74 = vector.load %arg9[%c0_31, %c0_32, %c0_33] : memref<1x1x32xf32, #tpu.memory_space<vmem>>, vector<1x1x32xf32>
    %75 = vector.shape_cast %74 : vector<1x1x32xf32> to vector<1x32xf32>
    %cst_34 = arith.constant dense<0.000000e+00> : vector<8xf32>
    %76 = vector.multi_reduction <add>, %71, %cst_34 [1] : vector<8x32xf32> to vector<8xf32>
    %77 = vector.shape_cast %76 : vector<8xf32> to vector<8x1xf32>
    %cst_35 = arith.constant 3.200000e+01 : f32
    %78 = vector.broadcast %cst_35 : f32 to vector<8x1xf32>
    %79 = arith.divf %77, %78 : vector<8x1xf32>
    %80 = arith.mulf %71, %71 : vector<8x32xf32>
    %cst_36 = arith.constant dense<0.000000e+00> : vector<8xf32>
    %81 = vector.multi_reduction <add>, %80, %cst_36 [1] : vector<8x32xf32> to vector<8xf32>
    %82 = vector.shape_cast %81 : vector<8xf32> to vector<8x1xf32>
    %cst_37 = arith.constant 3.200000e+01 : f32
    %83 = vector.broadcast %cst_37 : f32 to vector<8x1xf32>
    %84 = arith.divf %82, %83 : vector<8x1xf32>
    %85 = arith.mulf %79, %79 : vector<8x1xf32>
    %86 = arith.subf %84, %85 : vector<8x1xf32>
    %87 = vector.broadcast %79 : vector<8x1xf32> to vector<8x32xf32>
    %88 = arith.subf %71, %87 : vector<8x32xf32>
    %cst_38 = arith.constant 9.99999974E-6 : f32
    %89 = vector.broadcast %cst_38 : f32 to vector<8x1xf32>
    %90 = arith.addf %86, %89 : vector<8x1xf32>
    %91 = math.rsqrt %90 : vector<8x1xf32>
    %92 = vector.broadcast %91 : vector<8x1xf32> to vector<8x32xf32>
    %93 = arith.mulf %88, %92 : vector<8x32xf32>
    %94 = vector.broadcast %73 : vector<1x32xf32> to vector<8x32xf32>
    %95 = arith.mulf %93, %94 : vector<8x32xf32>
    %96 = vector.broadcast %75 : vector<1x32xf32> to vector<8x32xf32>
    %97 = arith.addf %95, %96 : vector<8x32xf32>
    %98 = arith.truncf %97 : vector<8x32xf32> to vector<8x32xbf16>
    %c0_39 = arith.constant 0 : index
    %c0_40 = arith.constant 0 : index
    %c0_41 = arith.constant 0 : index
    %99 = vector.load %arg10[%c0_39, %c0_40, %c0_41] : memref<1x32x64xbf16, #tpu.memory_space<vmem>>, vector<1x32x64xbf16>
    %100 = vector.shape_cast %99 : vector<1x32x64xbf16> to vector<32x64xbf16>
    %cst_42 = arith.constant dense<0.000000e+00> : vector<8x64xf32>
    %101 = tpu.matmul %98, %100, %cst_42 {dimension_numbers = #tpu.dot_dimension_numbers<[1], [0], [0], [1], [0, 0, 1, 1], [], []>} : vector<8x32xbf16>, vector<32x64xbf16>, vector<8x64xf32> -> vector<8x64xf32>
    %c0_43 = arith.constant 0 : index
    %c0_44 = arith.constant 0 : index
    %c0_45 = arith.constant 0 : index
    %102 = vector.load %arg11[%c0_43, %c0_44, %c0_45] : memref<1x1x64xf32, #tpu.memory_space<vmem>>, vector<1x1x64xf32>
    %103 = vector.shape_cast %102 : vector<1x1x64xf32> to vector<1x64xf32>
    %104 = vector.broadcast %103 : vector<1x64xf32> to vector<8x64xf32>
    %105 = arith.addf %101, %104 : vector<8x64xf32>
    %cst_46 = arith.constant 5.000000e-01 : f32
    %106 = vector.broadcast %cst_46 : f32 to vector<8x64xf32>
    %107 = arith.mulf %106, %105 : vector<8x64xf32>
    %cst_47 = arith.constant 0.707106769 : f32
    %108 = vector.broadcast %cst_47 : f32 to vector<8x64xf32>
    %109 = arith.mulf %105, %108 : vector<8x64xf32>
    %110 = math.erf %109 : vector<8x64xf32>
    %cst_48 = arith.constant 1.000000e+00 : f32
    %111 = vector.broadcast %cst_48 : f32 to vector<8x64xf32>
    %112 = arith.addf %111, %110 : vector<8x64xf32>
    %113 = arith.mulf %107, %112 : vector<8x64xf32>
    %114 = arith.truncf %113 : vector<8x64xf32> to vector<8x64xbf16>
    %c0_49 = arith.constant 0 : index
    %c0_50 = arith.constant 0 : index
    %c0_51 = arith.constant 0 : index
    %115 = vector.load %arg12[%c0_49, %c0_50, %c0_51] : memref<1x64x32xbf16, #tpu.memory_space<vmem>>, vector<1x64x32xbf16>
    %116 = vector.shape_cast %115 : vector<1x64x32xbf16> to vector<64x32xbf16>
    %cst_52 = arith.constant dense<0.000000e+00> : vector<8x32xf32>
    %117 = tpu.matmul %114, %116, %cst_52 {dimension_numbers = #tpu.dot_dimension_numbers<[1], [0], [0], [1], [0, 0, 1, 1], [], []>} : vector<8x64xbf16>, vector<64x32xbf16>, vector<8x32xf32> -> vector<8x32xf32>
    %c0_53 = arith.constant 0 : index
    %c0_54 = arith.constant 0 : index
    %c0_55 = arith.constant 0 : index
    %118 = vector.load %arg13[%c0_53, %c0_54, %c0_55] : memref<1x1x32xf32, #tpu.memory_space<vmem>>, vector<1x1x32xf32>
    %119 = vector.shape_cast %118 : vector<1x1x32xf32> to vector<1x32xf32>
    %120 = vector.broadcast %119 : vector<1x32xf32> to vector<8x32xf32>
    %121 = arith.addf %117, %120 : vector<8x32xf32>
    %122 = arith.addf %71, %121 : vector<8x32xf32>
    %c0_56 = arith.constant 0 : index
    %c0_57 = arith.constant 0 : index
    %123 = vector.load %arg14[%c0_56, %c0_57] : memref<8x32xf32, #tpu.memory_space<vmem>>, vector<8x32xf32>
    tpu.vector_store %arg14[%c0_56, %c0_57], %122 {strides = array<i32>} : memref<8x32xf32, #tpu.memory_space<vmem>>, vector<8x32xf32>,
    return
  }
  func.func @transform_0(%arg0: i32, %arg1: i32) -> (i32, i32) {
    %c0_i32 = arith.constant 0 : i32
    %c0_i32_0 = arith.constant 0 : i32
    return %arg0, %c0_i32 : i32, i32
  }
  func.func @transform_1(%arg0: i32, %arg1: i32) -> (i32, i32, i32) {
    %c0_i32 = arith.constant 0 : i32
    %c0_i32_0 = arith.constant 0 : i32
    %c0_i32_1 = arith.constant 0 : i32
    return %arg1, %c0_i32, %c0_i32_0 : i32, i32, i32
  }
  func.func @transform_2(%arg0: i32, %arg1: i32) -> (i32, i32, i32) {
    %c0_i32 = arith.constant 0 : i32
    %c0_i32_0 = arith.constant 0 : i32
    %c0_i32_1 = arith.constant 0 : i32
    return %arg1, %c0_i32, %c0_i32_0 : i32, i32, i32
  }
  func.func @transform_3(%arg0: i32, %arg1: i32) -> (i32, i32, i32) {
    %c0_i32 = arith.constant 0 : i32
    %c0_i32_0 = arith.constant 0 : i32
    %c0_i32_1 = arith.constant 0 : i32
    return %arg1, %c0_i32, %c0_i32_0 : i32, i32, i32
  }
  func.func @transform_4(%arg0: i32, %arg1: i32) -> (i32, i32, i32) {
    %c0_i32 = arith.constant 0 : i32
    %c0_i32_0 = arith.constant 0 : i32
    %c0_i32_1 = arith.constant 0 : i32
    return %arg1, %c0_i32, %c0_i32_0 : i32, i32, i32
  }
  func.func @transform_5(%arg0: i32, %arg1: i32) -> (i32, i32, i32) {
    %c0_i32 = arith.constant 0 : i32
    %c0_i32_0 = arith.constant 0 : i32
    %c0_i32_1 = arith.constant 0 : i32
    return %arg1, %c0_i32, %c0_i32_0 : i32, i32, i32
  }
  func.func @transform_6(%arg0: i32, %arg1: i32) -> (i32, i32, i32) {
    %c0_i32 = arith.constant 0 : i32
    %c0_i32_0 = arith.constant 0 : i32
    %c0_i32_1 = arith.constant 0 : i32
    return %arg1, %c0_i32, %c0_i32_0 : i32, i32, i32
  }
  func.func @transform_7(%arg0: i32, %arg1: i32) -> (i32, i32, i32) {
    %c0_i32 = arith.constant 0 : i32
    %c0_i32_0 = arith.constant 0 : i32
    %c0_i32_1 = arith.constant 0 : i32
    return %arg1, %c0_i32, %c0_i32_0 : i32, i32, i32
  }
  func.func @transform_8(%arg0: i32, %arg1: i32) -> (i32, i32, i32) {
    %c0_i32 = arith.constant 0 : i32
    %c0_i32_0 = arith.constant 0 : i32
    %c0_i32_1 = arith.constant 0 : i32
    return %arg1, %c0_i32, %c0_i32_0 : i32, i32, i32
  }
  func.func @transform_9(%arg0: i32, %arg1: i32) -> (i32, i32, i32) {
    %c0_i32 = arith.constant 0 : i32
    %c0_i32_0 = arith.constant 0 : i32
    %c0_i32_1 = arith.constant 0 : i32
    return %arg1, %c0_i32, %c0_i32_0 : i32, i32, i32
  }
  func.func @transform_10(%arg0: i32, %arg1: i32) -> (i32, i32, i32) {
    %c0_i32 = arith.constant 0 : i32
    %c0_i32_0 = arith.constant 0 : i32
    %c0_i32_1 = arith.constant 0 : i32
    return %arg1, %c0_i32, %c0_i32_0 : i32, i32, i32
  }
  func.func @transform_11(%arg0: i32, %arg1: i32) -> (i32, i32, i32) {
    %c0_i32 = arith.constant 0 : i32
    %c0_i32_0 = arith.constant 0 : i32
    %c0_i32_1 = arith.constant 0 : i32
    return %arg1, %c0_i32, %c0_i32_0 : i32, i32, i32
  }
  func.func @transform_12(%arg0: i32, %arg1: i32) -> (i32, i32) {
    %c0_i32 = arith.constant 0 : i32
    %c0_i32_0 = arith.constant 0 : i32
    return %arg0, %c0_i32 : i32, i32
  }
}

</mosaic_0001>

<bundles_post_ra>
// kernel: tpu_custom_call.1
= control target key start
LH: loop header
LB: loop body
LE: loop exit
PB: predicated region body
PF: predicated region fallthrough
CT: control target
= control target key end

     0   :  { %s3098_s0 = inlined_call_operand.hbm [shape: f32[16,32], index: 0, kind: input, shape index: {}]   ;;  %s3099_s1 = inlined_call_operand.hbm [shape: f32[2,1,32], index: 1, kind: input, shape index: {}]   ;;  %s3100_s2 = inlined_call_operand.hbm [shape: f32[2,1,32], index: 2, kind: input, shape index: {}]   ;;  %s3101_s3 = inlined_call_operand.vmem [shape: bf16[2,32,96], index: 3, kind: input, shape index: {}]   ;;  %s3102_s4 = inlined_call_operand.vmem [shape: bf16[2,32,32], index: 4, kind: input, shape index: {}]   ;;  %s3103_s5 = inlined_call_operand.vmem [shape: f32[2,1,32], index: 5, kind: input, shape index: {}]   ;;  %s3104_s6 = inlined_call_operand.vmem [shape: f32[2,1,32], index: 6, kind: input, shape index: {}]   ;;  %s3105_s7 = inlined_call_operand.hbm [shape: f32[2,1,32], index: 7, kind: input, shape index: {}]   ;;  %s3106_s8 = inlined_call_operand.vmem [shape: bf16[2,32,64], index: 8, kind: input, shape index: {}]   ;;  %s3107_s9 = inlined_call_operand.vmem [shape: f32[2,1,64], index: 9, kind: input, shape index: {}]   ;;  %s3108_s10 = inlined_call_operand.vmem [shape: bf16[2,64,32], index: 10, kind: input, shape index: {}]   ;;  %s3109_s11 = inlined_call_operand.vmem [shape: f32[2,1,32], index: 11, kind: input, shape index: {}]   ;;  %s3110_s12 = inlined_call_operand.hbm [shape: f32[16,32], index: 12, kind: output, shape index: {}]  }
   0x1   :  { %3124 = sst [smem:[#allocation29_spill]] %s3098_s0 }
   0x2   :  { %3125 = sst [smem:[#allocation30_spill]] %s3099_s1 }
   0x3   :  { %3126 = sst [smem:[#allocation31_spill]] %s3100_s2 }
   0x4   :  { %3127 = sst [smem:[#allocation32_spill]] %s3101_s3 }
   0x5   :  { %3128 = sst [smem:[#allocation33_spill]] %s3102_s4 }
   0x6   :  { %3129 = sst [smem:[#allocation34_spill]] %s3104_s6 }
   0x7   :  { %3130 = sst [smem:[#allocation35_spill]] %s3105_s7 }
   0x8   :  { %3131 = sst [smem:[#allocation36_spill]] %s3106_s8 }
   0x9   :  { %3132 = sst [smem:[#allocation37_spill]] %s3107_s9 }
   0xa   :  { %3133 = sst [smem:[#allocation38_spill]] %s3108_s10 }
   0xb   :  { %3134 = sst [smem:[#allocation39_spill]] %s3109_s11 }
   0xc   :  { %3135 = sst [smem:[#allocation40_spill]] %s3110_s12 }
   0xd   :  { %17 = vsyncpa [#allocation3], 0 }
   0xe   :  { %19 = vsyncpa [#allocation3 + $0x1], 0 }
   0xf   :  { %20 = vsyncpa [#allocation6], 0 }
  0x10   :  { %22 = vsyncpa [#allocation6 + $0x1], 0 }
  0x11   :  { %23 = vsyncpa [#allocation9], 0 }
  0x12   :  { %25 = vsyncpa [#allocation9 + $0x1], 0 }
  0x13   :  { %26 = vsyncpa [#allocation4], 0 }
  0x14   :  { %28 = vsyncpa [#allocation4 + $0x1], 0  ;;  %s2519_s21 = smov 0   ;;  %s2521_s22 = smov 0  }
  0x15   :  { %s2523_s23 = smov 0   ;;  %s2525_s24 = smov 0  }
  0x16   :  { %s2527_s25 = smov 0   ;;  %s2529_s26 = smov 0  }
  0x17   :  { %s2531_s27 = smov 0   ;;  %s2533_s28 = smov 0  }
  0x18   :  { %s2535_s29 = smov 0   ;;  %s2537_s30 = smov 0  }
  0x19   :  { %s2539_s13 = smov 0  }
  0x1a LB: > { %3136 = sst [smem:[#allocation15_spill]] %s2405_s22  ;;  %s2573_s14 = sadd.s32 4294967295, %s2441_s13   ;;  %s2441_s13 = sphi %s2539_s13, %s34_s13   ;;  %s2437_s30 = sphi %s2537_s30, %s3191_s30   ;;  %s2433_s29 = sphi %s2535_s29, %s3190_s29   ;;  %s2429_s28 = sphi %s2533_s28, %s3189_s28   ;;  %s2425_s27 = sphi %s2531_s27, %s3188_s27   ;;  %s2421_s26 = sphi %s2529_s26, %s3187_s26   ;;  %s2417_s25 = sphi %s2527_s25, %s3186_s25   ;;  %s2413_s24 = sphi %s2525_s24, %s3185_s24   ;;  %s2409_s23 = sphi %s2523_s23, %s3184_s23   ;;  %s2405_s22 = sphi %s2521_s22, %s3183_s22   ;;  %s2401_s21 = sphi %s2519_s21, %s3182_s21  }
  0x1b   : > { %3137 = sst [smem:[#allocation16_spill]] %s2409_s23  ;;  %s43_s15 = sadd.s32 1, %s2433_s29 }
  0x1c   : > { %3138 = sst [smem:[#allocation17_spill]] %s2413_s24  ;;  %p2576_p0 = scmp.ge.s32.totalorder %s43_s15, 2 }
  0x1d   : > { %3139 = sst [smem:[#allocation18_spill]] %s2417_s25  ;;  %p61_p1 = scmp.eq.s32.totalorder %s2441_s13, 0 }
  0x1e   : > { %3140 = sst [smem:[#allocation19_spill]] %s2421_s26  ;;  %p67_p2 = scmp.eq.s32.totalorder %s2573_s14, 0 }
  0x1f   : > { %3141 = sst [smem:[#allocation20_spill]] %s2429_s28  ;;  %s79_s17 = sadd.s32 1, %s2409_s23 }
  0x20   : > { %3142 = sst [smem:[#allocation21_spill]] %s2433_s29  ;;  %s3193_s15 = smov (%p2576_p0, %s43_s15), 0 }
  0x21   : > { %3143 = sst [smem:[#allocation22_spill]] %s2437_s30  ;;  %p86_p3 = scmp.ne.s32.totalorder %s2409_s23, %s2405_s22 }
  0x22   : > { %3145 = sst [smem:[#allocation23_spill]] %s3193_s15  ;;  %p92_p4 = scmp.ne.s32.totalorder %s2405_s22, %s2401_s21 }
  0x23   : > { %s76_s18 = ssub.s32 %s2433_s29, %s3193_s15  ;;  %p88_p6 = por %p86_p3, %p61_p1 }
  0x24   : > { %p77_p5 = scmp.eq.s32.totalorder %s76_s18, 0  ;;  %p2596_p7 = por %p92_p4, %p67_p2 }
  0x25   : > { %p2039_p8 = scmp.lt.s32.totalorder %s2441_s13, 4  ;;  %s421_s12 = sand.u32 1, %s2441_s13  }
  0x26   : > { %s2602_s20 = scalar_select %p77_p5, %s2409_s23, %s79_s17  }
  0x27   : > { %s2606_s21 = sand.u32 1, %s2409_s23   ;;  %s3148_s1 = sld [smem:[#allocation30_spill]] }
  0x28   : > { %3147 = sst [smem:[#allocation24_spill]] %s2602_s20  ;;  %s424_s11 = scalar_lea.vmem [#allocation5], %s2606_s21 }
  0x29   : > { %s431_s10 = sshll.u32 %s424_s11, 4  ;;  %p2615_p9 = pnand %p2039_p8, %p88_p6  ;;  %s432_s10 = int_to_ptr.vmem [resolvable:$true] %s431_s10 }
  0x2a   : > { %p1929_p10 = scmp.ge.s32.totalorder %s2441_s13, 1  ;;  %p526_p11 = scmp.lt.s32.totalorder %s2441_s13, 5 }
  0x2b   : > { %s2621_s28 = scalar_lea.sflag [#allocation6], %s421_s12  ;;  %s1924_s15 = sadd.s32 4294967294, %s2441_s13  }
  0x2c   : > { %p2626_p12 = pnand %p1929_p10, %p526_p11  ;;  %p60_p13 = scmp.ne.s32.totalorder %s2421_s26, %s2417_s25 }
  0x2d   : > { %s427_s18 = scalar_lea.hbm %s3148_s1, %s2433_s29  ;;  %s53_s1 = sadd.s32 1, %s2421_s26 }
  0x2e   : > { %s429_s17 = sshll.u32 %s427_s18, 4  ;;  %s46_s18 = sadd.s32 1, %s2437_s30  ;;  %s430_s17 = int_to_ptr.hbm [resolvable:$true] %s429_s17 }
  0x2f   : > { %2028 = dma.hbm_to_vmem [thread:$0]  (!%p2615_p9), %s430_s17, 16, %s432_s10, %s2621_s28  }
  0x30   : > { %s3195_s18 = smov (!%p2576_p0, %s46_s18), %s2437_s30  ;;  %p66_p4 = scmp.ne.s32.totalorder %s2417_s25, %s2413_s24 }
  0x31   : > { %p48_p3 = scmp.ge.s32.totalorder %s3195_s18, 2  ;;  %p2642_p5 = por %p61_p1, %p60_p13 }
  0x32   : > { %p376_p6 = scmp.eq.s32.totalorder %s2573_s14, 3  ;;  %p2651_p10 = por %p67_p2, %p66_p4 }
  0x33   : > { %s3197_s18 = smov (%p48_p3, %s3195_s18), 0  ;;  %p382_p1 = scmp.eq.s32.totalorder %s1924_s15, 3 }
  0x34   : > { %3152 = sst [smem:[#allocation25_spill]] %s3197_s18  ;;  %p2655_p0 = por %p376_p6, %p60_p13 }
  0x35   : > { %s50_s17 = ssub.s32 %s2437_s30, %s3197_s18  ;;  %s402_s23 = sand.u32 1, %s2421_s26  }
  0x36   : > { %s3154_s16 = scalar_select %p2655_p0, 1, 0 }
  0x37   : > { %p51_p11 = scmp.eq.s32.totalorder %s50_s17, 0  ;;  %p2662_p3 = por %p382_p1, %p66_p4 }
  0x38   : > { %3155 = sst [smem:[#allocation26_spill]] %s3154_s16  ;;  %s1927_s8 = sshll.u32 %s402_s23, 3 }
  0x39   : > { %s3156_s24 = scalar_select %p2662_p3, 1, 0 }
  0x3a   : > { %s2667_s9 = scalar_select %p51_p11, %s2421_s26, %s53_s1  }
  0x3b   : > { %3157 = sst [smem:[#allocation27_spill]] %s3156_s24  ;;  %s1928_s6 = sshll.u32 %s2437_s30, 3 }
  0x3c   : > { %3158 = sst [smem:[#allocation28_spill]] %s2667_s9  ;;  %s406_s15 = scalar_lea.vmem [#allocation2], %s1927_s8 }
  0x3d   : > { %s3159_s0 = sld [smem:[#allocation29_spill]]  ;;  %s414_s17 = sshll.u32 %s406_s15, 4  ;;  %s415_s17 = int_to_ptr.vmem [resolvable:$true] %s414_s17 }
  0x3e   : > { %p2023_p2 = pnand %p2039_p8, %p2642_p5  ;;  %s3160_s2 = sld [smem:[#allocation31_spill]] }
  0x3f   : > { %s441_s3 = scalar_lea.vmem [#allocation7], %s2606_s21  ;;  %s3161_s7 = sld [smem:[#allocation35_spill]] }
  0x40   : > { %s448_s4 = sshll.u32 %s441_s3, 4  ;;  %s486_s15 = scalar_lea.vmem [#allocation8], %s2606_s21  ;;  %s449_s4 = int_to_ptr.vmem [resolvable:$true] %s448_s4 }
  0x41   : > { %s484_s9 = scalar_lea.sflag [#allocation9], %s2606_s21 }
  0x43   : > { %s410_s16 = scalar_lea.hbm %s3159_s0, %s1928_s6  ;;  %s403_s6 = scalar_lea.sflag [#allocation3], %s402_s23 }
  0x44   : > { %s412_s18 = sshll.u32 %s410_s16, 4  ;;  %s444_s30 = scalar_lea.hbm %s3160_s2, %s2433_s29  ;;  %s413_s18 = int_to_ptr.hbm [resolvable:$true] %s412_s18 }
  0x45   : > { %s446_s26 = sshll.u32 %s444_s30, 4  ;;  %s489_s12 = scalar_lea.hbm %s3161_s7, %s2433_s29  ;;  %s447_s26 = int_to_ptr.hbm [resolvable:$true] %s446_s26 }
  0x46   : > { %2025 = dma.hbm_to_vmem [thread:$0]  (!%p2023_p2), %s413_s18, 128, %s415_s17, %s403_s6  }
  0x47   : > { %2031 = dma.hbm_to_vmem [thread:$0]  (!%p2615_p9), %s447_s26, 16, %s449_s4, %s2621_s28  }
  0x48   : > { %s493_s0 = sshll.u32 %s486_s15, 4  ;;  %s491_s24 = sshll.u32 %s489_s12, 4  ;;  %s494_s0 = int_to_ptr.vmem [resolvable:$true] %s493_s0  ;;  %s492_s24 = int_to_ptr.hbm [resolvable:$true] %s491_s24 }
  0x49   : > { %2034 = dma.hbm_to_vmem [thread:$0]  (!%p2615_p9), %s492_s24, 16, %s494_s0, %s484_s9  }
  0x4a   : > { %530 = sbr.rel (%p2626_p12) target bundleno = 1957 (0x7a5), region = 68  ;;  %s2696_s23 = sand.u32 (!%p2626_p12), 1, %s2417_s25  }
  0x4b   : > { %s1930_s26 = sshll.u32 (!%p2626_p12), %s2696_s23, 3  ;;  %s533_s30 = scalar_lea.sflag (!%p2626_p12), [#allocation3], %s2696_s23 }
  0x4c   : > { %s536_s28 = scalar_lea.vmem (!%p2626_p12), [#allocation2], %s1930_s26 }
  0x4f   : > { %2384 = dma.done.wait (%p2651_p10), %s533_s30, 128  }
  0x50   : > { %2386 = vsyncadd (%p2651_p10), %s533_s30, 4294967168  ;;  %s542_s0 = sand.u32 1, %s2573_s14   ;;  %s2706_s24 = sand.u32 1, %s2405_s22  }
  0x51   : > { %s543_s20 = scalar_lea.sflag [#allocation6], %s542_s0 }
  0x52   : > { %2388 = dma.done.wait (%p2596_p7), %s543_s20, 32  }
  0x53   : > { %2390 = vsyncadd (%p2596_p7), %s543_s20, 4294967264  ;;  %s561_s18 = scalar_lea.sflag [#allocation9], %s2706_s24 }
  0x54   : > { %2392 = dma.done.wait (%p2596_p7), %s561_s18, 16  }
  0x55   : > { %2394 = vsyncadd (%p2596_p7), %s561_s18, 4294967280  ;;  %p649_p8 = scmp.lt.s32.totalorder %s2425_s27, 1  ;;  %s3162_s19 = sld [smem:[#allocation32_spill]] }
  0x56   : > { %s3163_s9 = sld [smem:[#allocation33_spill]]  ;;  %s2762_s20 = scalar_lea.vmem [#allocation10], %s1930_s26 }
  0x57   : > { %s2722_s14 = scalar_select %p649_p8, %s2425_s27, 1 }
  0x58   : > { %s3164_s18 = sld [smem:[#allocation34_spill]]  ;;  %p1940_p7 = scmp.ne.s32.totalorder %s2425_s27, 0 }
  0x59   : > { %s1998_s17 = sshll.u32 %s2722_s14, 4  ;;  %s3165_s2 = sld [smem:[#allocation36_spill]] }
  0x5a   : > { %s3166_s4 = sld [smem:[#allocation37_spill]]  ;;  %s2001_s8 = sshll.u32 %s2722_s14, 5 }
  0x5b   : > { %s2732_s16 = scalar_lea.vmem %s3162_s19, %s1998_s17  ;;  %s3167_s25 = sld [smem:[#allocation38_spill]] }
  0x5c   : > { %s2737_s30 = scalar_lea.vmem %s3163_s9, %s1998_s17  ;;  %s3168_s22 = sld [smem:[#allocation39_spill]] }
  0x5e   : > { %s664_s10 = scalar_lea.vmem %s3164_s18, %s2722_s14  ;;  %685 = sbr.rel (%p1940_p7) target bundleno = 101 (0x65), region = 88 }
  0x5f   : > { %s2746_s7 = scalar_lea.vmem %s3165_s2, %s1998_s17 }
  0x60   : > { %s672_s6 = scalar_lea.vmem %s3166_s4, %s2722_s14 }
  0x61   : > { %s2756_s12 = scalar_lea.vmem %s3167_s25, %s2001_s8 }
  0x62   : > { %s680_s0 = scalar_lea.vmem %s3168_s22, %s2722_s14 }
  0x63   : > { %v686_v0 = vld [vmem:[%s536_s28] sm:$0xff]  ;;  %vm687_vm0 = vcmask 261120  }
  0x64   : > { %688 = vst.msk [vmem:[%s2762_s20] sm:$0xff] %vm687_vm0, %v686_v0 }
  0x65 PF: > { %vm692_vm1 = vcmask 261120   ;;  %v2443_v5 = vmov 32.0   ;;  %v2003_v11 = vld [vmem:[%s2732_s16 + $0x8] sm:$0xff]  ;;  %v2002_v13 = vld [vmem:[%s2732_s16] sm:$0xff]  ;;  %s3169_s2 = scalar_lea.vmem [#allocation5], %s2706_s24  ;;  %s3170_s22 = scalar_lea.vmem [#allocation7], %s2706_s24 }
  0x66   : > { %2167 = vrcp.f32 %v2443_v5  ;;  %758 = vmatpush.bf16.msra.mxu0 %v2003_v11  ;;  %v2160_v28 = vld [vmem:[%s3169_s2] ss:$0 sm:$0xff]  ;;  %s2444_s25 = smov 104   ;;  %s2445_s27 = smov 120   ;;  %v2448_v46 = vmov 1983009808  }
  0x67   : > { %v2161_v31 = vld [vmem:[%s3170_s22] ss:$0 sm:$0xff]  ;;  %s2446_s29 = smov 112   ;;  %s2447_s26 = smov 96   ;;  %v782_v47 = vunpack.c.l.s4 %v2448_v46  ;;  %vm777_vm6 = vcmask 1047556   ;;  %vm1150_vm7 = vcmask 64512  }
  0x68   : > { %v2449_v62 = vmov 1934713408   ;;  %s2450_s28 = smov 64   ;;  %vm1278_vm8 = vcmask 1043456   ;;  %s2451_s21 = smov 16   ;;  %vm1475_vm9 = vcmask 130048  }
  0x69   : > { %v2794_v53 = vunpack.c.0.s8 %v782_v47  ;;  %v806_v63 = vunpack.c.l.s4 %v2449_v62  ;;  %s2452_s11 = smov 8   ;;  %s2453_s17 = smov 24   ;;  %vm1477_vm10 = vcmask 195584  }
  0x6a   : > { %759 = vmatpush.bf16.msra.mxu0 %v2002_v13  ;;  %s3171_s18 = scalar_lea.vmem %s3103_s5, %s2722_s14  ;;  %s3173_s3 = scalar_lea.vmem [#allocation8], %s2706_s24 }
  0x6b   : > { %v2767_v1 = vld [vmem:[%s2762_s20] sm:$0xff]  ;;  %v2804_v5 = vunpack.c.0.s8 %v806_v63  ;;  %s3175_s24 = sld [smem:[#allocation20_spill]] }
  0x6c   : > { %v693_v2 = vsel %vm692_vm1, %v2767_v1, 0.0  ;;  %v704_v3 = vmul.f32 %v2767_v1, %v2767_v1  ;;  %v2168_v6 = vpop.eup %2167 }
  0x6d   : > { %694 = vadd.xlane.f32.xlu0 %v693_v2  ;;  %v697_v7 = vmul.f32 32.0, %v2168_v6  ;;  %vm701_vm2 = vweird.f32 %v2168_v6 }
  0x6e   : > { %v705_v4 = vsel %vm692_vm1, %v704_v3, 0.0 }
  0x6f   : > { %v698_v8 = vsub.f32 1.0, %v697_v7 }
  0x71   : > { %v699_v9 = vmul.f32 %v2168_v6, %v698_v8 }
  0x73   : > { %v700_v10 = vadd.f32 %v2168_v6, %v699_v9 }
  0x75   : > { %706 = vadd.xlane.f32.xlu0 %v705_v4  ;;  %v2776_v14 = vsel %vm701_vm2, %v2168_v6, %v700_v10 }
  0xe0   : > { %v695_v12 = vpop.xlane.xlu0 %694 }
  0xe1   : > { %v703_v15 = vmul.f32 %v2776_v14, %v695_v12 }
  0xe3   : > { %v709_v17 = vmul.f32 %v703_v15, %v703_v15  ;;  %v711_v27 = vsub.f32 %v2767_v1, %v703_v15 }
  0xe8   : > { %v707_v16 = vpop.xlane.xlu0 %706 }
  0xe9   : > { %v708_v18 = vmul.f32 %v707_v16, %v2776_v14 }
  0xeb   : > { %v710_v19 = vsub.f32 %v708_v18, %v709_v17 }
  0xed   : > { %v712_v20 = vadd.f32 1e-05, %v710_v19 }
  0xef   : > { %2169 = vrsqrt.f32 %v712_v20  ;;  %vm719_vm4 = vweird.f32 %v712_v20 }
  0xf5   : > { %v2170_v21 = vpop.eup %2169 }
  0xf6   : > { %v714_v22 = vmul.f32 %v2170_v21, %v712_v20  ;;  %vm720_vm3 = vweird.f32 %v2170_v21 }
  0xf7   : > { %vm721_vm5 = vmor %vm719_vm4, %vm720_vm3  ;;  %vm1669_vm3 = vcmask 523264  }
  0xf8   : > { %v715_v23 = vmul.f32 %v2170_v21, %v714_v22 }
  0xfa   : > { %v716_v24 = vmul.f32 0.5, %v715_v23 }
  0xfc   : > { %v717_v25 = vsub.f32 1.5, %v716_v24 }
  0xfe   : > { %v718_v26 = vmul.f32 %v2170_v21, %v717_v25 }
 0x100   : > { %v722_v29 = vsel %vm721_vm5, %v2170_v21, %v718_v26 }
 0x101   : > { %v723_v30 = vmul.f32 %v722_v29, %v711_v27 }
 0x103   : > { %v727_v32 = vmul.f32 %v2160_v28, %v723_v30 }
 0x105   : > { %v731_v33 = vadd.f32 %v2161_v31, %v727_v32 }
 0x107   : > { %v732_v34 = vpack.c.bf16 %v731_v33, %v731_v33 }
 0x109   : > { %1949 = vmatmul.msk.bf16.vlgmr.msra.gmra.mxu0 %vm692_vm1, %v732_v34 }
 0x186   : > { %v761_v35 = vpop.f32.mrf.mxu0 }
 0x187   : > { %896 = vrot.lane.b32.xlu2 %v761_v35, %s2444_s25  ;;  %892 = vrot.lane.b32.xlu1 %v761_v35, %s2445_s27  ;;  %v765_v37 = vmul.f32 0.17677669, %v761_v35 }
 0x189   : > { %v779_v49 = vrot.slane %v765_v37, 4 }
 0x18e   : > { %v763_v36 = vpop.f32.mrf.mxu0 }
 0x18f   : > { %894 = vrot.lane.b32.xlu1 %v761_v35, %s2446_s29 }
 0x197   : > { %767 = vrot.lane.b32.xlu1 %v765_v37, %s2445_s27  ;;  %s3178_s27 = sld [smem:[#allocation40_spill]] }
 0x19f   : > { %773 = vrot.lane.b32.xlu1 %v765_v37, %s2444_s25 }
 0x1e1   : > { %v897_v40 = vpop.permute.xlu2 %896 }
 0x1f9   : > { %v893_v38 = vpop.permute.xlu1 %892 }
 0x1fa   : > { %v2786_v39 = vpack.i.bf16 %v893_v38, %v761_v35 }
 0x1fc   : > { %2141 = vrot.lane.b32.xlu2 %v2786_v39, %s2447_s26 }
 0x201   : > { %v895_v41 = vpop.permute.xlu1 %894 }
 0x202   : > { %v2789_v42 = vpack.i.bf16 %v897_v40, %v895_v41 }
 0x204   : > { %2146 = vrot.lane.b32.xlu0 %v2789_v42, %s2447_s26  ;;  %770 = vrot.lane.b32.xlu2 %v765_v37, %s2446_s29  ;;  %s1701_s26 = sshll.u32 %s2762_s20, 4  ;;  %s1702_s26 = int_to_ptr.vmem [resolvable:$true] %s1701_s26 }
 0x209   : > { %v768_v44 = vpop.permute.xlu1 %767 }
 0x20a   : > { %v791_v57 = vrot.slane %v768_v44, 4 }
 0x211   : > { %v774_v50 = vpop.permute.xlu1 %773 }
 0x212   : > { %v789_v54 = vrot.slane %v774_v50, 4  ;;  %v792_v59 = vsel %vm777_vm6, %v774_v50, %v791_v57 }
 0x213   : > { %v800_v2 = vperm.slane %v792_v59, %v2794_v53 }
 0x214   : > { %v790_v58 = vsel %vm777_vm6, %v789_v54, %v768_v44 }
 0x215   : > { %v796_v0 = vperm.slane %v790_v58, %v2794_v53  ;;  %v813_v7 = vrot.slane %v800_v2, 4 }
 0x217   : > { %v801_v6 = vrot.slane %v796_v0, 4 }
 0x256   : > { %v2142_v43 = vpop.permute.xlu2 %2141 }
 0x257   : > { %v2144_v12 = vunpack.i.h.bf16 %v2142_v43  ;;  %v2143_v13 = vunpack.i.l.bf16 %v2142_v43 }
 0x259   : > { %v924_v20 = vrot.slane %v2144_v12, 4  ;;  %v912_v21 = vrot.slane %v2143_v13, 4 }
 0x25e   : > { %v771_v45 = vpop.permute.xlu2 %770 }
 0x25f   : > { %v776_v48 = vrot.slane %v771_v45, 4  ;;  %v780_v52 = vsel %vm777_vm6, %v771_v45, %v779_v49 }
 0x260   : > { %v788_v56 = vperm.slane %v780_v52, %v2794_v53 }
 0x261   : > { %v778_v51 = vsel %vm777_vm6, %v776_v48, %v765_v37 }
 0x262   : > { %v784_v55 = vperm.slane %v778_v51, %v2794_v53  ;;  %v815_v61 = vrot.slane %v788_v56, 4  ;;  %v814_v11 = vsel %vm777_vm6, %v813_v7, %v788_v56 }
 0x263   : > { %v820_v16 = vperm.slane %v814_v11, %v2804_v5 }
 0x264   : > { %v803_v60 = vrot.slane %v784_v55, 4  ;;  %v816_v4 = vsel %vm777_vm6, %v800_v2, %v815_v61  ;;  %v802_v10 = vsel %vm777_vm6, %v801_v6, %v784_v55 }
 0x265   : > { %v824_v9 = vperm.slane %v816_v4, %v2804_v5  ;;  %v808_v15 = vperm.slane %v802_v10, %v2804_v5  ;;  %v829_v26 = vrot.slane %v820_v16, 4 }
 0x266   : > { %v804_v3 = vsel %vm777_vm6, %v796_v0, %v803_v60 }
 0x267   : > { %v812_v8 = vperm.slane %v804_v3, %v2804_v5  ;;  %v831_v18 = vrot.slane %v824_v9, 4  ;;  %v825_v24 = vrot.slane %v808_v15, 4  ;;  %v830_v46 = vsel %vm777_vm6, 0.0, %v829_v26 }
 0x269   : > { %v827_v17 = vrot.slane %v812_v8, 4  ;;  %v832_v27 = vsel %vm777_vm6, 0.0, %v831_v18  ;;  %v844_v32 = vsel %vm777_vm6, %v831_v18, %v820_v16  ;;  %v826_v45 = vsel %vm777_vm6, 0.0, %v825_v24 }
 0x26a   : > { %v849_v36 = vrot.slane %v832_v27, 4  ;;  %v848_v52 = vperm.slane %v844_v32, %v2794_v53 }
 0x26b   : > { %v828_v25 = vsel %vm777_vm6, 0.0, %v827_v17  ;;  %v833_v47 = vsel %vm777_vm6, %v827_v17, %v808_v15 }
 0x26c   : > { %v838_v35 = vrot.slane %v828_v25, 4  ;;  %v850_v54 = vsel %vm777_vm6, %v849_v36, %v830_v46  ;;  %v837_v59 = vperm.slane %v833_v47, %v2794_v53  ;;  %v869_v3 = vrot.slane %v848_v52, 4 }
 0x26d   : > { %v854_v2 = vperm.slane %v850_v54, %v2794_v53 }
 0x26e   : > { %v839_v60 = vsel %vm777_vm6, %v838_v35, %v826_v45  ;;  %v857_v11 = vrot.slane %v837_v59, 4 }
 0x26f   : > { %v843_v10 = vperm.slane %v839_v60, %v2794_v53  ;;  %v870_v26 = vsel %vm777_vm6, %v854_v2, %v869_v3 }
 0x271   : > { %v858_v32 = vsel %vm777_vm6, %v843_v10, %v857_v11 }
 0x276   : > { %v2147_v19 = vpop.permute.xlu0 %2146 }
 0x277   : > { %v2149_v22 = vunpack.i.h.bf16 %v2147_v19  ;;  %v2148_v23 = vunpack.i.l.bf16 %v2147_v19 }
 0x279   : > { %v922_v28 = vrot.slane %v2149_v22, 4  ;;  %v925_v29 = vsel %vm777_vm6, %v2149_v22, %v924_v20  ;;  %v910_v30 = vrot.slane %v2148_v23, 4  ;;  %v913_v31 = vsel %vm777_vm6, %v2148_v23, %v912_v21 }
 0x27a   : > { %v933_v33 = vperm.slane %v925_v29, %v2794_v53  ;;  %v921_v34 = vperm.slane %v913_v31, %v2794_v53  ;;  %v867_v20 = vrot.slane %v854_v2, 4 }
 0x27b   : > { %v923_v37 = vsel %vm777_vm6, %v922_v28, %v2144_v12  ;;  %v911_v38 = vsel %vm777_vm6, %v910_v30, %v2143_v13  ;;  %v855_v30 = vrot.slane %v843_v10, 4 }
 0x27c   : > { %v929_v40 = vperm.slane %v923_v37, %v2794_v53  ;;  %v946_v41 = vrot.slane %v933_v33, 4  ;;  %v917_v43 = vperm.slane %v911_v38, %v2794_v53  ;;  %v948_v44 = vrot.slane %v921_v34, 4 }
 0x27d   : > { %v878_v37 = vperm.slane %v870_v26, %v2804_v5  ;;  %v856_v45 = vsel %vm777_vm6, %v855_v30, %v837_v59 }
 0x27e   : > { %v934_v48 = vrot.slane %v929_v40, 4  ;;  %v936_v49 = vrot.slane %v917_v43, 4  ;;  %v947_v50 = vsel %vm777_vm6, %v946_v41, %v921_v34  ;;  %v949_v51 = vsel %vm777_vm6, %v933_v33, %v948_v44 }
 0x27f   : > { %v953_v55 = vperm.slane %v947_v50, %v2804_v5  ;;  %v957_v56 = vperm.slane %v949_v51, %v2804_v5  ;;  %v868_v33 = vsel %vm777_vm6, %v867_v20, %v848_v52  ;;  %v866_v44 = vperm.slane %v858_v32, %v2804_v5 }
 0x280   : > { %v935_v57 = vsel %vm777_vm6, %v934_v48, %v917_v43  ;;  %v937_v58 = vsel %vm777_vm6, %v929_v40, %v936_v49  ;;  %v874_v46 = vperm.slane %v868_v33, %v2804_v5  ;;  %v883_v52 = vrot.slane %v878_v37, 4 }
 0x281   : > { %v941_v61 = vperm.slane %v935_v57, %v2804_v5  ;;  %v945_v62 = vperm.slane %v937_v58, %v2804_v5  ;;  %v962_v63 = vrot.slane %v953_v55, 4  ;;  %v964_v0 = vrot.slane %v957_v56, 4 }
 0x282   : > { %v862_v57 = vperm.slane %v856_v45, %v2804_v5 }
 0x283   : > { %v958_v4 = vrot.slane %v941_v61, 4  ;;  %v960_v6 = vrot.slane %v945_v62, 4  ;;  %v965_v7 = vsel %vm777_vm6, 0.0, %v964_v0  ;;  %v977_v9 = vsel %vm777_vm6, %v964_v0, %v953_v55 }
 0x284   : > { %v982_v8 = vrot.slane %v965_v7, 4  ;;  %v963_v13 = vsel %vm777_vm6, 0.0, %v962_v63  ;;  %v981_v16 = vperm.slane %v977_v9, %v2794_v53  ;;  %v885_v62 = vrot.slane %v866_v44, 4 }
 0x285   : > { %v961_v12 = vsel %vm777_vm6, 0.0, %v960_v6  ;;  %v966_v15 = vsel %vm777_vm6, %v960_v6, %v941_v61  ;;  %v959_v21 = vsel %vm777_vm6, 0.0, %v958_v4  ;;  %v879_v63 = vrot.slane %v874_v46, 4 }
 0x286   : > { %v970_v17 = vperm.slane %v966_v15, %v2794_v53  ;;  %v971_v18 = vrot.slane %v961_v12, 4  ;;  %v983_v19 = vsel %vm777_vm6, %v982_v8, %v963_v13  ;;  %v1002_v23 = vrot.slane %v981_v16, 4 }
 0x287   : > { %v987_v22 = vperm.slane %v983_v19, %v2794_v53  ;;  %v884_v4 = vsel %vm777_vm6, %v883_v52, %v866_v44  ;;  %v881_v6 = vrot.slane %v862_v57, 4  ;;  %v880_v8 = vsel %vm777_vm6, %v879_v63, %v862_v57 }
 0x288   : > { %v972_v24 = vsel %vm777_vm6, %v971_v18, %v959_v21  ;;  %v990_v25 = vrot.slane %v970_v17, 4  ;;  %v886_v9 = vsel %vm777_vm6, %v878_v37, %v885_v62  ;;  %v889_v10 = vpack.c.bf16 %v884_v4, %v884_v4 }
 0x289   : > { %v976_v27 = vperm.slane %v972_v24, %v2794_v53  ;;  %v1003_v28 = vsel %vm777_vm6, %v987_v22, %v1002_v23  ;;  %v1000_v29 = vrot.slane %v987_v22, 4  ;;  %v882_v11 = vsel %vm777_vm6, %v874_v46, %v881_v6 }
 0x28a   : > { %v1011_v31 = vperm.slane %v1003_v28, %v2804_v5  ;;  %v887_v12 = vpack.c.bf16 %v880_v8, %v880_v8  ;;  %v890_v13 = vpack.c.bf16 %v886_v9, %v886_v9  ;;  %v888_v15 = vpack.c.bf16 %v882_v11, %v882_v11 }
 0x28b   : > { %v991_v34 = vsel %vm777_vm6, %v976_v27, %v990_v25  ;;  %v988_v35 = vrot.slane %v976_v27, 4  ;;  %v1001_v36 = vsel %vm777_vm6, %v1000_v29, %v981_v16 }
 0x28c   : > { %v999_v38 = vperm.slane %v991_v34, %v2804_v5  ;;  %v1016_v40 = vrot.slane %v1011_v31, 4  ;;  %v1007_v41 = vperm.slane %v1001_v36, %v2804_v5 }
 0x28d   : > { %v989_v43 = vsel %vm777_vm6, %v988_v35, %v970_v17 }
 0x28e   : > { %v1017_v47 = vsel %vm777_vm6, %v1016_v40, %v999_v38  ;;  %v995_v48 = vperm.slane %v989_v43, %v2804_v5  ;;  %v1012_v49 = vrot.slane %v1007_v41, 4  ;;  %v1018_v50 = vrot.slane %v999_v38, 4 }
 0x28f   : > { %v1022_v51 = vpack.c.bf16 %v1017_v47, %v1017_v47 }
 0x290   : > { %v1013_v54 = vsel %vm777_vm6, %v1012_v49, %v995_v48  ;;  %v1019_v55 = vsel %vm777_vm6, %v1011_v31, %v1018_v50  ;;  %v1014_v56 = vrot.slane %v995_v48, 4 }
 0x291   : > { %v1193_v58 = vsel %vm1150_vm7, %v1022_v51, 0  ;;  %v1020_v59 = vpack.c.bf16 %v1013_v54, %v1013_v54  ;;  %v1023_v60 = vpack.c.bf16 %v1019_v55, %v1019_v55 }
 0x292   : > { %1202 = vmatpush.bf16.xpose.msra.mxu3 %v1193_v58  ;;  %v1015_v61 = vsel %vm777_vm6, %v1007_v41, %v1014_v56 }
 0x293   : > { %v1155_v0 = vsel %vm1150_vm7, %v1020_v59, 0  ;;  %v1212_v2 = vsel %vm1150_vm7, %v1023_v60, 0  ;;  %v1021_v3 = vpack.c.bf16 %v1015_v61, %v1015_v61 }
 0x294   : > { %1164 = vmatpush.bf16.xpose.msra.mxu1 %v1155_v0  ;;  %1221 = vmatpush.bf16.xpose.msrb.mxu0 %v1212_v2 }
 0x295   : > { %v1174_v7 = vsel %vm1150_vm7, %v1021_v3, 0 }
 0x296   : > { %1183 = vmatpush.bf16.xpose.msra.mxu2 %v1174_v7 }
 0x299   : > { %1952 = vmatmul.msk.bf16.vlgmr.msra.gmra.mxu3 %vm1150_vm7, %v889_v10 }
 0x29b   : > { %1950 = vmatmul.msk.bf16.vlgmr.msra.gmra.mxu1 %vm1150_vm7, %v887_v12  ;;  %1953 = vmatmul.msk.bf16.vlgmr.msrb.gmra.mxu0 %vm1150_vm7, %v890_v13 }
 0x29d   : > { %1951 = vmatmul.msk.bf16.vlgmr.msra.gmra.mxu2 %vm1150_vm7, %v888_v15 }
 0x318   : > { %v1166_v16 = vpop.f32.mrf.mxu1  ;;  %v1223_v17 = vpop.f32.mrf.mxu0 }
 0x319   : > { %v1227_v18 = vsel %vm1150_vm7, %v1166_v16, -inf  ;;  %v1236_v19 = vsel %vm1150_vm7, %v1223_v17, -inf }
 0x31a   : > { %1228 = vmax.xlane.f32.xlu0 %v1227_v18  ;;  %1237 = vmax.xlane.f32.xlu2 %v1236_v19 }
 0x31c   : > { %v1204_v20 = vpop.f32.mrf.mxu3 }
 0x31d   : > { %v1233_v25 = vsel %vm1150_vm7, %v1204_v20, -inf }
 0x320   : > { %v1168_v21 = vpop.f32.mrf.mxu1  ;;  %v1185_v22 = vpop.f32.mrf.mxu2 }
 0x321   : > { %v1225_v23 = vpop.f32.mrf.mxu0  ;;  %v1230_v24 = vsel %vm1150_vm7, %v1185_v22, -inf }
 0x322   : > { %1231 = vmax.xlane.f32.xlu1 %v1230_v24  ;;  %1234 = vmax.xlane.f32.xlu2 %v1233_v25 }
 0x324   : > { %v1206_v26 = vpop.f32.mrf.mxu3 }
 0x328   : > { %v1187_v27 = vpop.f32.mrf.mxu2 }
 0x33a   : > { %2151 = vrot.lane.b32.xlu2 %v2786_v39, %s2450_s28 }
 0x33b   : > { %2156 = vrot.lane.b32.xlu1 %v2789_v42, %s2450_s28 }
 0x38d   : > { %v1238_v28 = vpop.xlane.xlu2 %1237  ;;  %v1229_v39 = vpop.xlane.xlu0 %1228 }
 0x38e   : > { %v1242_v29 = vsub.f32 %v1223_v17, %v1238_v28  ;;  %v1239_v42 = vsub.f32 %v1166_v16, %v1229_v39 }
 0x390   : > { %v1249_v30 = vmul.f32 1.442695, %v1242_v29  ;;  %v1243_v43 = vmul.f32 1.442695, %v1239_v42 }
 0x392   : > { %2171 = vpow2.f32 %v1249_v30 }
 0x395   : > { %v1235_v31 = vpop.xlane.xlu2 %1234  ;;  %v1232_v32 = vpop.xlane.xlu1 %1231 }
 0x396   : > { %v1241_v33 = vsub.f32 %v1204_v20, %v1235_v31  ;;  %v1240_v36 = vsub.f32 %v1185_v22, %v1232_v32 }
 0x398   : > { %v1247_v34 = vmul.f32 1.442695, %v1241_v33  ;;  %v2890_v35 = vpop.eup %2171  ;;  %v1245_v38 = vmul.f32 1.442695, %v1240_v36 }
 0x399   : > { %v1260_v37 = vsel %vm1150_vm7, %v2890_v35, 0.0 }
 0x39a   : > { %2173 = vpow2.f32 %v1247_v34  ;;  %1261 = vadd.xlane.f32.xlu2 %v1260_v37 }
 0x39b   : > { %2175 = vpow2.f32 %v1245_v38 }
 0x39c   : > { %2177 = vpow2.f32 %v1243_v43 }
 0x39d   : > { %v2152_v45 = vpop.permute.xlu2 %2151 }
 0x39e   : > { %v2154_v46 = vunpack.i.h.bf16 %v2152_v45  ;;  %v2153_v47 = vunpack.i.l.bf16 %v2152_v45 }
 0x3a0   : > { %v2894_v40 = vpop.eup %2173  ;;  %v1050_v50 = vrot.slane %v2154_v46, 4  ;;  %v1038_v51 = vrot.slane %v2153_v47, 4 }
 0x3a1   : > { %v1257_v41 = vsel %vm1150_vm7, %v2894_v40, 0.0  ;;  %v2898_v44 = vpop.eup %2175 }
 0x3a2   : > { %1258 = vadd.xlane.f32.xlu0 %v1257_v41  ;;  %v1254_v48 = vsel %vm1150_vm7, %v2898_v44, 0.0  ;;  %v2902_v55 = vpop.eup %2177 }
 0x3a3   : > { %v1251_v0 = vsel %vm1150_vm7, %v2902_v55, 0.0 }
 0x3aa   : > { %1255 = vadd.xlane.f32.xlu0 %v1254_v48 }
 0x3ad   : > { %v2157_v49 = vpop.permute.xlu1 %2156 }
 0x3ae   : > { %v2159_v52 = vunpack.i.h.bf16 %v2157_v49  ;;  %v2158_v54 = vunpack.i.l.bf16 %v2157_v49 }
 0x3b0   : > { %v1048_v56 = vrot.slane %v2159_v52, 4  ;;  %v1036_v57 = vrot.slane %v2158_v54, 4  ;;  %v1039_v58 = vsel %vm777_vm6, %v2158_v54, %v1038_v51  ;;  %v1051_v59 = vsel %vm777_vm6, %v2159_v52, %v1050_v50 }
 0x3b1   : > { %v1047_v60 = vperm.slane %v1039_v58, %v2794_v53  ;;  %v1059_v61 = vperm.slane %v1051_v59, %v2794_v53 }
 0x3b2   : > { %v1037_v62 = vsel %vm777_vm6, %v1036_v57, %v2153_v47  ;;  %v1049_v63 = vsel %vm777_vm6, %v1048_v56, %v2154_v46  ;;  %1252 = vadd.xlane.f32.xlu0 %v1251_v0 }
 0x3b3   : > { %v1043_v2 = vperm.slane %v1037_v62, %v2794_v53  ;;  %v1055_v3 = vperm.slane %v1049_v63, %v2794_v53  ;;  %v1072_v4 = vrot.slane %v1059_v61, 4  ;;  %v1074_v6 = vrot.slane %v1047_v60, 4 }
 0x3b5   : > { %v1060_v7 = vrot.slane %v1055_v3, 4  ;;  %v1062_v8 = vrot.slane %v1043_v2, 4  ;;  %v1073_v9 = vsel %vm777_vm6, %v1072_v4, %v1047_v60  ;;  %v1075_v10 = vsel %vm777_vm6, %v1059_v61, %v1074_v6 }
 0x3b6   : > { %v1079_v11 = vperm.slane %v1073_v9, %v2804_v5  ;;  %v1083_v12 = vperm.slane %v1075_v10, %v2804_v5 }
 0x3b7   : > { %v1061_v13 = vsel %vm777_vm6, %v1060_v7, %v1043_v2  ;;  %v1063_v15 = vsel %vm777_vm6, %v1055_v3, %v1062_v8 }
 0x3b8   : > { %v1067_v16 = vperm.slane %v1061_v13, %v2804_v5  ;;  %v1071_v17 = vperm.slane %v1063_v15, %v2804_v5  ;;  %v1088_v18 = vrot.slane %v1079_v11, 4  ;;  %v1090_v19 = vrot.slane %v1083_v12, 4 }
 0x3ba   : > { %v1084_v20 = vrot.slane %v1067_v16, 4  ;;  %v1086_v21 = vrot.slane %v1071_v17, 4  ;;  %v1091_v22 = vsel %vm777_vm6, 0.0, %v1090_v19  ;;  %v1103_v23 = vsel %vm777_vm6, %v1090_v19, %v1079_v11 }
 0x3bb   : > { %v1108_v24 = vrot.slane %v1091_v22, 4  ;;  %v1089_v26 = vsel %vm777_vm6, 0.0, %v1088_v18  ;;  %v1107_v28 = vperm.slane %v1103_v23, %v2794_v53 }
 0x3bc   : > { %v1087_v25 = vsel %vm777_vm6, 0.0, %v1086_v21  ;;  %v1092_v27 = vsel %vm777_vm6, %v1086_v21, %v1067_v16  ;;  %v1085_v32 = vsel %vm777_vm6, 0.0, %v1084_v20 }
 0x3bd   : > { %v1097_v29 = vrot.slane %v1087_v25, 4  ;;  %v1096_v30 = vperm.slane %v1092_v27, %v2794_v53  ;;  %v1109_v31 = vsel %vm777_vm6, %v1108_v24, %v1089_v26  ;;  %v1128_v34 = vrot.slane %v1107_v28, 4 }
 0x3be   : > { %v1113_v33 = vperm.slane %v1109_v31, %v2794_v53 }
 0x3bf   : > { %v1098_v36 = vsel %vm777_vm6, %v1097_v29, %v1085_v32  ;;  %v1116_v37 = vrot.slane %v1096_v30, 4 }
 0x3c0   : > { %v1102_v38 = vperm.slane %v1098_v36, %v2794_v53  ;;  %v1129_v39 = vsel %vm777_vm6, %v1113_v33, %v1128_v34  ;;  %v1126_v42 = vrot.slane %v1113_v33, 4 }
 0x3c1   : > { %v1137_v41 = vperm.slane %v1129_v39, %v2804_v5 }
 0x3c2   : > { %v1117_v43 = vsel %vm777_vm6, %v1102_v38, %v1116_v37  ;;  %v1114_v45 = vrot.slane %v1102_v38, 4  ;;  %v1127_v46 = vsel %vm777_vm6, %v1126_v42, %v1107_v28 }
 0x3c3   : > { %v1125_v47 = vperm.slane %v1117_v43, %v2804_v5  ;;  %v1142_v48 = vrot.slane %v1137_v41, 4  ;;  %v1133_v49 = vperm.slane %v1127_v46, %v2804_v5 }
 0x3c4   : > { %v1115_v50 = vsel %vm777_vm6, %v1114_v45, %v1096_v30 }
 0x3c5   : > { %v1143_v51 = vsel %vm777_vm6, %v1142_v48, %v1125_v47  ;;  %v1144_v52 = vrot.slane %v1125_v47, 4  ;;  %v1121_v54 = vperm.slane %v1115_v50, %v2804_v5  ;;  %v1138_v56 = vrot.slane %v1133_v49, 4 }
 0x3c6   : > { %v1148_v57 = vpack.c.bf16 %v1143_v51, %v1143_v51 }
 0x3c7   : > { %v1139_v58 = vsel %vm777_vm6, %v1138_v56, %v1121_v54  ;;  %v1145_v59 = vsel %vm777_vm6, %v1137_v41, %v1144_v52  ;;  %v1140_v60 = vrot.slane %v1121_v54, 4 }
 0x3c8   : > { %v1318_v61 = vsel %vm1278_vm8, %v1148_v57, 0  ;;  %v1146_v62 = vpack.c.bf16 %v1139_v58, %v1139_v58  ;;  %v1149_v63 = vpack.c.bf16 %v1145_v59, %v1145_v59 }
 0x3c9   : > { %1327 = vmatpush.bf16.msrb.mxu3 %v1318_v61  ;;  %v1141_v0 = vsel %vm777_vm6, %v1133_v49, %v1140_v60 }
 0x3ca   : > { %v1280_v2 = vsel %vm1278_vm8, %v1146_v62, 0  ;;  %v1337_v3 = vsel %vm1278_vm8, %v1149_v63, 0  ;;  %v1147_v4 = vpack.c.bf16 %v1141_v0, %v1141_v0 }
 0x3cb   : > { %1289 = vmatpush.bf16.msrb.mxu1 %v1280_v2  ;;  %1346 = vmatpush.bf16.msra.mxu0 %v1337_v3 }
 0x3cc   : > { %v1299_v6 = vsel %vm1278_vm8, %v1147_v4, 0 }
 0x3cd   : > { %1308 = vmatpush.bf16.msrb.mxu2 %v1299_v6 }
 0x40d   : > { %v1262_v7 = vpop.xlane.xlu2 %1261 }
 0x40e   : > { %2179 = vrcp.f32 %v1262_v7 }
 0x414   : > { %v2180_v8 = vpop.eup %2179 }
 0x415   : > { %v1270_v9 = vmul.f32 %v2180_v8, %v2890_v35  ;;  %v1259_v10 = vpop.xlane.xlu0 %1258 }
 0x416   : > { %2181 = vrcp.f32 %v1259_v10 }
 0x417   : > { %v1274_v11 = vpack.c.bf16 %v1270_v9, %v1270_v9 }
 0x419   : > { %1957 = vmatmul.msk.bf16.vlgmr.msra.gmra.mxu0 %vm1150_vm7, %v1274_v11 }
 0x41c   : > { %v2182_v12 = vpop.eup %2181 }
 0x41d   : > { %v1269_v13 = vmul.f32 %v2182_v12, %v2894_v40  ;;  %v1256_v15 = vpop.xlane.xlu0 %1255 }
 0x41e   : > { %2183 = vrcp.f32 %v1256_v15 }
 0x41f   : > { %v1273_v16 = vpack.c.bf16 %v1269_v13, %v1269_v13 }
 0x421   : > { %1956 = vmatmul.msk.bf16.vlgmr.msrb.gmra.mxu3 %vm1150_vm7, %v1273_v16 }
 0x424   : > { %v2184_v17 = vpop.eup %2183 }
 0x425   : > { %v1268_v18 = vmul.f32 %v2184_v17, %v2898_v44  ;;  %v1253_v19 = vpop.xlane.xlu0 %1252 }
 0x426   : > { %2185 = vrcp.f32 %v1253_v19 }
 0x427   : > { %v1272_v20 = vpack.c.bf16 %v1268_v18, %v1268_v18 }
 0x429   : > { %1955 = vmatmul.msk.bf16.vlgmr.msrb.gmra.mxu2 %vm1150_vm7, %v1272_v20 }
 0x42c   : > { %v2186_v35 = vpop.eup %2185 }
 0x42d   : > { %v1267_v21 = vmul.f32 %v2186_v35, %v2902_v55 }
 0x42f   : > { %v1271_v22 = vpack.c.bf16 %v1267_v21, %v1267_v21 }
 0x431   : > { %1954 = vmatmul.msk.bf16.vlgmr.msrb.gmra.mxu1 %vm1150_vm7, %v1271_v22 }
 0x496   : > { %v1348_v40 = vpop.f32.mrf.mxu0 }
 0x497   : > { %v1364_v25 = vrot.slane %v1348_v40, 4 }
 0x49e   : > { %v1350_v23 = vpop.f32.mrf.mxu0 }
 0x4a4   : > { %v1329_v24 = vpop.f32.mrf.mxu3 }
 0x4a5   : > { %v1352_v28 = vrot.slane %v1329_v24, 4 }
 0x4ac   : > { %v1310_v26 = vpop.f32.mrf.mxu2  ;;  %v1331_v27 = vpop.f32.mrf.mxu3 }
 0x4ad   : > { %v1365_v44 = vsel %vm777_vm6, %v1364_v25, %v1310_v26  ;;  %v1366_v29 = vrot.slane %v1310_v26, 4 }
 0x4ae   : > { %v1371_v30 = vperm.slane %v1365_v44, %v2794_v53  ;;  %v1291_v31 = vpop.f32.mrf.mxu1 }
 0x4af   : > { %v1367_v32 = vsel %vm777_vm6, %v1348_v40, %v1366_v29  ;;  %v1353_v55 = vsel %vm777_vm6, %v1352_v28, %v1291_v31  ;;  %v1354_v33 = vrot.slane %v1291_v31, 4 }
 0x4b0   : > { %v1375_v34 = vperm.slane %v1367_v32, %v2794_v53  ;;  %v1376_v36 = vrot.slane %v1371_v30, 4  ;;  %v1359_v37 = vperm.slane %v1353_v55, %v2794_v53 }
 0x4b1   : > { %v1355_v38 = vsel %vm777_vm6, %v1329_v24, %v1354_v33 }
 0x4b2   : > { %v1388_v39 = vrot.slane %v1375_v34, 4  ;;  %v1363_v42 = vperm.slane %v1355_v38, %v2794_v53  ;;  %v1377_v41 = vsel %vm777_vm6, %v1376_v36, %v1359_v37  ;;  %v1378_v43 = vrot.slane %v1359_v37, 4  ;;  %v2162_v38 = vld [vmem:[%s3171_s18] ss:$0 sm:$0xff] }
 0x4b3   : > { %v1383_v45 = vperm.slane %v1377_v41, %v2804_v5 }
 0x4b4   : > { %v1379_v46 = vsel %vm777_vm6, %v1371_v30, %v1378_v43  ;;  %v1389_v47 = vsel %vm777_vm6, %v1388_v39, %v1363_v42  ;;  %v1390_v48 = vrot.slane %v1363_v42, 4  ;;  %v1312_v49 = vpop.f32.mrf.mxu2  ;;  %v2004_v30 = vld [vmem:[%s2737_s30] sm:$0xff] }
 0x4b5   : > { %v1387_v50 = vperm.slane %v1379_v46, %v2804_v5  ;;  %v1395_v51 = vperm.slane %v1389_v47, %v2804_v5  ;;  %v1400_v57 = vrot.slane %v1383_v45, 4  ;;  %v2006_v49 = vld [vmem:[%s2746_s7] sm:$0xff] }
 0x4b6   : > { %v1391_v52 = vsel %vm777_vm6, %v1375_v34, %v1390_v48  ;;  %v1293_v54 = vpop.f32.mrf.mxu1  ;;  %v2007_v48 = vld [vmem:[%s2746_s7 + $0x8] sm:$0xff] }
 0x4b7   : > { %v1399_v56 = vperm.slane %v1391_v52, %v2804_v5  ;;  %v1402_v58 = vrot.slane %v1387_v50, 4  ;;  %v1404_v60 = vrot.slane %v1395_v51, 4  ;;  %v1401_v2 = vsel %vm777_vm6, 0.0, %v1400_v57  ;;  %1581 = vmatpush.bf16.msra.mxu2 %v2007_v48 }
 0x4b9   : > { %v1403_v59 = vsel %vm777_vm6, 0.0, %v1402_v58  ;;  %v1406_v61 = vrot.slane %v1399_v56, 4  ;;  %v1408_v62 = vsel %vm777_vm6, %v1402_v58, %v1383_v45  ;;  %v1405_v9 = vsel %vm777_vm6, 0.0, %v1404_v60 }
 0x4ba   : > { %v1413_v63 = vrot.slane %v1403_v59, 4  ;;  %v1412_v0 = vperm.slane %v1408_v62, %v2794_v53 }
 0x4bb   : > { %v1407_v3 = vsel %vm777_vm6, 0.0, %v1406_v61  ;;  %v1419_v4 = vsel %vm777_vm6, %v1406_v61, %v1395_v51  ;;  %1582 = vmatpush.bf16.msra.mxu2 %v2006_v49 }
 0x4bc   : > { %v1424_v6 = vrot.slane %v1407_v3, 4  ;;  %v1414_v7 = vsel %vm777_vm6, %v1413_v63, %v1401_v2  ;;  %v1423_v8 = vperm.slane %v1419_v4, %v2794_v53  ;;  %v1432_v11 = vrot.slane %v1412_v0, 4  ;;  %v2164_v4 = vld [vmem:[%s3173_s3] ss:$0 sm:$0xff] }
 0x4bd   : > { %v1418_v10 = vperm.slane %v1414_v7, %v2794_v53 }
 0x4be   : > { %v1425_v12 = vsel %vm777_vm6, %v1424_v6, %v1405_v9  ;;  %v1444_v13 = vrot.slane %v1423_v8, 4  ;;  %v2165_v9 = vld [vmem:[%s672_s6] ss:$0 sm:$0xff] }
 0x4bf   : > { %v1429_v15 = vperm.slane %v1425_v12, %v2794_v53  ;;  %v1430_v16 = vrot.slane %v1418_v10, 4  ;;  %v1433_v17 = vsel %vm777_vm6, %v1418_v10, %v1432_v11 }
 0x4c0   : > { %v1441_v40 = vperm.slane %v1433_v17, %v2804_v5  ;;  %v2011_v17 = vld [vmem:[%s2756_s12 + $0x18] sm:$0xff] }
 0x4c1   : > { %v1445_v18 = vsel %vm777_vm6, %v1429_v15, %v1444_v13  ;;  %v1431_v19 = vsel %vm777_vm6, %v1430_v16, %v1412_v0  ;;  %v1442_v20 = vrot.slane %v1429_v15, 4  ;;  %1677 = vmatpush.bf16.msra.mxu3 %v2011_v17 }
 0x4c2   : > { %v1453_v35 = vperm.slane %v1445_v18, %v2804_v5  ;;  %v1437_v21 = vperm.slane %v1431_v19, %v2804_v5  ;;  %v1460_v44 = vrot.slane %v1441_v40, 4 }
 0x4c3   : > { %v1443_v22 = vsel %vm777_vm6, %v1442_v20, %v1423_v8 }
 0x4c4   : > { %v1458_v23 = vrot.slane %v1453_v35, 4  ;;  %v1449_v53 = vperm.slane %v1443_v22, %v2804_v5  ;;  %v1456_v24 = vrot.slane %v1437_v21, 4  ;;  %v1461_v29 = vsel %vm777_vm6, %v1453_v35, %v1460_v44  ;;  %v2005_v5 = vld [vmem:[%s2737_s30 + $0x8] sm:$0xff] }
 0x4c5   : > { %1509 = vmatpush.bf16.msra.mxu1 %v2005_v5 }
 0x4c6   : > { %v1459_v25 = vsel %vm777_vm6, %v1458_v23, %v1441_v40  ;;  %v1454_v26 = vrot.slane %v1449_v53, 4  ;;  %v1457_v27 = vsel %vm777_vm6, %v1449_v53, %v1456_v24  ;;  %v2009_v24 = vld [vmem:[%s2756_s12 + $0x8] sm:$0xff] }
 0x4c7   : > { %1467 = vrot.lane.b32.xlu0 %v1459_v25, %s2451_s21  ;;  %1463 = vrot.lane.b32.xlu1 %v1457_v27, %s2452_s11  ;;  %s3179_s11 = smov %s3178_s27  ;;  %s1689_s21 = scalar_lea.sflag [#allocation4], %s2696_s23 }
 0x4c8   : > { %v1455_v28 = vsel %vm777_vm6, %v1454_v26, %v1437_v21  ;;  %v2010_v21 = vld [vmem:[%s2756_s12 + $0x10] sm:$0xff]  ;;  %s2331_s16 = scalar_lea.hbm %s3179_s11, 16 }
 0x4c9   : > { %1510 = vmatpush.bf16.msra.mxu1 %v2004_v30  ;;  %1678 = vmatpush.bf16.msra.mxu3 %v2010_v21 }
 0x4cd   : > { %1679 = vmatpush.bf16.msra.mxu3 %v2009_v24 }
 0x4cf   : > { %1471 = vrot.lane.b32.xlu1 %v1461_v29, %s2453_s17 }
 0x539   : > { %v1464_v31 = vpop.permute.xlu1 %1463  ;;  %v1468_v32 = vpop.permute.xlu0 %1467 }
 0x53a   : > { %v1474_v55 = vsel %vm1150_vm7, %v1455_v28, %v1464_v31  ;;  %v2008_v28 = vld [vmem:[%s2756_s12] sm:$0xff] }
 0x53b   : > { %v1476_v34 = vsel %vm1475_vm9, %v1474_v55, %v1468_v32  ;;  %1680 = vmatpush.bf16.msra.mxu3 %v2008_v28 }
 0x541   : > { %v1472_v33 = vpop.permute.xlu1 %1471 }
 0x542   : > { %v1478_v36 = vsel %vm1477_vm10, %v1476_v34, %v1472_v33 }
 0x543   : > { %v1479_v37 = vpack.c.bf16 %v1478_v36, %v1478_v36 }
 0x545   : > { %1966 = vmatmul.msk.bf16.vlgmr.msra.gmra.mxu1 %vm692_vm1, %v1479_v37 }
 0x5c2   : > { %v1512_v39 = vpop.f32.mrf.mxu1 }
 0x5c3   : > { %v1513_v42 = vadd.f32 %v2162_v38, %v1512_v39 }
 0x5c5   : > { %v3008_v41 = vadd.f32 %v1513_v42, %v2767_v1 }
 0x5c7   : > { %v1519_v43 = vsel %vm692_vm1, %v3008_v41, 0.0  ;;  %v1523_v45 = vmul.f32 %v3008_v41, %v3008_v41 }
 0x5c8   : > { %1520 = vadd.xlane.f32.xlu1 %v1519_v43 }
 0x5c9   : > { %v1524_v46 = vsel %vm692_vm1, %v1523_v45, 0.0 }
 0x5ca   : > { %v1514_v47 = vpop.f32.mrf.mxu1  ;;  %1525 = vadd.xlane.f32.xlu0 %v1524_v46 }
 0x63b   : > { %v1521_v50 = vpop.xlane.xlu1 %1520 }
 0x63c   : > { %v1522_v51 = vmul.f32 %v1521_v50, %v2776_v14 }
 0x63d   : > { %v1526_v1 = vpop.xlane.xlu0 %1525 }
 0x63e   : > { %v1528_v52 = vmul.f32 %v1522_v51, %v1522_v51  ;;  %v1527_v54 = vmul.f32 %v1526_v1, %v2776_v14  ;;  %v1530_v0 = vsub.f32 %v3008_v41, %v1522_v51  ;;  %v2163_v14 = vld [vmem:[%s664_s10] ss:$0 sm:$0xff]  ;;  %s1995_s10 = sshll.u32 %s3175_s24, 3 }
 0x63f   : > { %s1699_s29 = scalar_lea.hbm %s3178_s27, %s1995_s10 }
 0x640   : > { %v1529_v56 = vsub.f32 %v1527_v54, %v1528_v52  ;;  %s1703_s28 = sshll.u32 %s1699_s29, 4  ;;  %s1704_s28 = int_to_ptr.hbm [resolvable:$true] %s1703_s28 }
 0x641   : > { %s2325_s17 = sshra.s32 %s1704_s28, 4  ;;  %s2326_s17 = int_to_ptr.hbm [resolvable:$true] %s2325_s17 }
 0x642   : > { %v1531_v57 = vadd.f32 1e-05, %v1529_v56  ;;  %s2327_s14 = scalar_lea.hbm %s2326_s17, 8  ;;  %p2332_p4 = scmp.lt.s32.totalorder %s2326_s17, %s3179_s11 }
 0x643   : > { %p2328_p9 = scmp.ne.s32.totalorder %s2326_s17, %s2327_s14  ;;  %p2333_p5 = scmp.lt.s32.totalorder %s2331_s16, %s2327_s14 }
 0x644   : > { %2187 = vrsqrt.f32 %v1531_v57  ;;  %vm1538_vm12 = vweird.f32 %v1531_v57 }
 0x645   : > { %p2329_p12 = pnand %p2328_p9, %p2655_p0  ;;  %p2334_p6 = por %p2333_p5, %p2332_p4 }
 0x647   : > { %p2330_p13 = pneg %p2329_p12 }
 0x649   : > { %p2335_p10 = pnand %p2334_p6, %p2330_p13 }
 0x64a   : > { %v2188_v58 = vpop.eup %2187 }
 0x64b   : > { %v1533_v59 = vmul.f32 %v2188_v58, %v1531_v57  ;;  %vm1539_vm11 = vweird.f32 %v2188_v58  ;;  %v2166_v57 = vld [vmem:[%s680_s0] ss:$0 sm:$0xff] }
 0x64c   : > { %vm1540_vm13 = vmor %vm1538_vm12, %vm1539_vm11 }
 0x64d   : > { %v1534_v60 = vmul.f32 %v2188_v58, %v1533_v59 }
 0x64f   : > { %v1535_v61 = vmul.f32 0.5, %v1534_v60 }
 0x651   : > { %v1536_v62 = vsub.f32 1.5, %v1535_v61 }
 0x653   : > { %v1537_v63 = vmul.f32 %v2188_v58, %v1536_v62 }
 0x655   : > { %v1541_v2 = vsel %vm1540_vm13, %v2188_v58, %v1537_v63 }
 0x656   : > { %v1542_v3 = vmul.f32 %v1541_v2, %v1530_v0 }
 0x658   : > { %v1546_v6 = vmul.f32 %v2163_v14, %v1542_v3 }
 0x65a   : > { %v1550_v7 = vadd.f32 %v2164_v4, %v1546_v6 }
 0x65c   : > { %v1551_v8 = vpack.c.bf16 %v1550_v7, %v1550_v7 }
 0x65e   : > { %1975 = vmatmul.msk.bf16.vlgmr.msra.gmra.mxu2 %vm692_vm1, %v1551_v8 }
 0x6e1   : > { %v1584_v10 = vpop.f32.mrf.mxu2 }
 0x6e2   : > { %v1585_v11 = vadd.f32 %v2165_v9, %v1584_v10 }
 0x6e4   : > { %v1589_v12 = vmul.f32 0.70710677, %v1585_v11  ;;  %v1588_v1 = vmul.f32 0.5, %v1585_v11 }
 0x6e6   : > { %v1590_v13 = vmul.f32 %v1589_v12, %v1589_v12 }
 0x6e8   : > { %v1591_v15 = vmin.f32 %v1590_v13, 16.0 }
 0x6e9   : > { %v1586_v16 = vpop.f32.mrf.mxu2 }
 0x6ea   : > { %v1592_v18 = vmul.f32 2.1237322e-06, %v1591_v15  ;;  %v1603_v19 = vmul.f32 3.8918573e-05, %v1591_v15 }
 0x6ec   : > { %v1593_v20 = vadd.f32 0.00028619796, %v1592_v18  ;;  %v1604_v35 = vadd.f32 0.001143296, %v1603_v19 }
 0x6ee   : > { %v1594_v22 = vmul.f32 %v1593_v20, %v1591_v15  ;;  %v1605_v40 = vmul.f32 %v1604_v35, %v1591_v15 }
 0x6f0   : > { %v1606_v23 = vadd.f32 0.014752088, %v1605_v40  ;;  %v1595_v53 = vadd.f32 0.0036580483, %v1594_v22 }
 0x6f2   : > { %v1607_v25 = vmul.f32 %v1606_v23, %v1591_v15  ;;  %v1596_v27 = vmul.f32 %v1595_v53, %v1591_v15 }
 0x6f4   : > { %v1608_v26 = vadd.f32 0.112945676, %v1607_v25  ;;  %v1597_v5 = vadd.f32 0.05243302, %v1596_v27 }
 0x6f6   : > { %v1609_v44 = vmul.f32 %v1608_v26, %v1591_v15  ;;  %v1598_v32 = vmul.f32 %v1597_v5, %v1591_v15 }
 0x6f8   : > { %v1610_v29 = vadd.f32 0.4994258, %v1609_v44  ;;  %v1599_v55 = vadd.f32 0.18741608, %v1598_v32 }
 0x6fa   : > { %v1611_v30 = vmul.f32 %v1610_v29, %v1591_v15  ;;  %v1600_v34 = vmul.f32 %v1599_v55, %v1591_v15 }
 0x6fc   : > { %v1612_v31 = vadd.f32 1.0, %v1611_v30  ;;  %v1601_v39 = vadd.f32 1.1283791, %v1600_v34 }
 0x6fe   : > { %2189 = vrcp.f32 %v1612_v31  ;;  %v1624_v38 = vand.u32 2147483648, %v1612_v31  ;;  %v1622_v43 = vand.u32 2147483647, %v1612_v31  ;;  %vm1618_vm15 = vweird.f32 %v1612_v31 }
 0x6ff   : > { %v1602_v47 = vmul.f32 %v1601_v39, %v1589_v12 }
 0x700   : > { %v1625_v46 = vor.u32 1.1754944e-38, %v1624_v38  ;;  %vm1623_vm2 = vcmp.eq.f32.partialorder %v1622_v43, 8.507059e+37 }
 0x704   : > { %v2190_v33 = vpop.eup %2189 }
 0x705   : > { %v1614_v36 = vmul.f32 %v2190_v33, %v1612_v31  ;;  %vm1619_vm14 = vweird.f32 %v2190_v33 }
 0x706   : > { %vm1620_vm0 = vmor %vm1618_vm15, %vm1619_vm14 }
 0x707   : > { %v1615_v37 = vsub.f32 1.0, %v1614_v36 }
 0x709   : > { %v1616_v42 = vmul.f32 %v2190_v33, %v1615_v37 }
 0x70b   : > { %v1617_v45 = vadd.f32 %v2190_v33, %v1616_v42 }
 0x70d   : > { %v1621_v48 = vsel %vm1620_vm0, %v2190_v33, %v1617_v45 }
 0x70e   : > { %v1626_v49 = vsel %vm1623_vm2, %v1625_v46, %v1621_v48 }
 0x70f   : > { %v1627_v50 = vmul.f32 %v1626_v49, %v1602_v47 }
 0x711   : > { %v1976_v51 = vclamps-f32 %v1627_v50, 1.0 }
 0x713   : > { %v1630_v52 = vadd.f32 1.0, %v1976_v51 }
 0x715   : > { %v1631_v54 = vmul.f32 %v1630_v52, %v1588_v1 }
 0x717   : > { %v1632_v56 = vpack.c.bf16 %v1631_v54, %v1631_v54 }
 0x719   : > { %1993 = vmatmul.msk.bf16.vlgmr.msra.gmra.mxu3 %vm1669_vm3, %v1632_v56 }
 0x79c   : > { %v1682_v58 = vpop.f32.mrf.mxu3 }
 0x79d   : > { %v1683_v59 = vadd.f32 %v2166_v57, %v1682_v58 }
 0x79f   : > { %v1686_v60 = vadd.f32 %v1683_v59, %v3008_v41 }
 0x7a1   : > { %1687 = vst.msk [vmem:[%s2762_s20] sm:$0xff] %vm692_vm1, %v1686_v60 }
 0x7a2   : > { %2338 = shalt.err (!%p2335_p10)
}
 0x7a3   : > { %2020 = dma.vmem_to_hbm [thread:$0]  (%p2655_p0), %s1702_s26, 128, %s1704_s28, %s1689_s21  }
 0x7a4   : > { %v1684_v41 = vpop.f32.mrf.mxu3 }
 0x7a5 PF: > { %s3180_s23 = sld [smem:[#allocation17_spill]]  ;;  %p2040_p1 = scmp.ge.s32.totalorder %s2441_s13, 2 }
 0x7a7   : > { %p2036_p11 = pnand %p2040_p1, %p2662_p3 }
 0x7a9   : > { %p2037_p2 = pneg %p2036_p11 }
 0x7ab   : > { %s1715_s30 = sand.u32 1, %s3180_s23  }
 0x7ac   : > { %s1716_s1 = scalar_lea.sflag [#allocation4], %s1715_s30 }
 0x7ad   : > { %2396 = dma.done.wait (%p2037_p2), %s1716_s1, 128  }
 0x7ae   : > { %2398 = vsyncadd (%p2037_p2), %s1716_s1, 4294967168  ;;  %s34_s13 = sadd.s32 1, %s2441_s13   ;;  %s3182_s21 = sld [smem:[#allocation15_spill]] }
 0x7af   : > { %p31_p8 = scmp.ge.s32.totalorder %s34_s13, 6   ;;  %s3183_s22 = sld [smem:[#allocation16_spill]] }
 0x7b0   : > { %s3184_s23 = sld [smem:[#allocation24_spill]] }
 0x7b1   : > { %s3185_s24 = sld [smem:[#allocation18_spill]] }
 0x7b2   : > { %s3186_s25 = sld [smem:[#allocation19_spill]] }
 0x7b3   : > { %s3187_s26 = sld [smem:[#allocation28_spill]]  ;;  %33 = sbr.rel (!%p31_p8) target bundleno = 26 (0x1a), region = 178 }
 0x7b4   : > { %s3188_s27 = sld [smem:[#allocation21_spill]] }
 0x7b5   : > { %s3189_s28 = sld [smem:[#allocation22_spill]] }
 0x7b6   : > { %s3190_s29 = sld [smem:[#allocation23_spill]] }
 0x7b7   : > { %s3191_s30 = sld [smem:[#allocation25_spill]] }
 0x7b8   :  { %1722 = vsyncpa [#allocation3], 1 }
 0x7b9   :  { %1724 = vsyncpa [#allocation3 + $0x1], 1 }
 0x7ba   :  { %1725 = vsyncpa [#allocation6], 1 }
 0x7bb   :  { %1727 = vsyncpa [#allocation6 + $0x1], 1 }
 0x7bc   :  { %1728 = vsyncpa [#allocation9], 1 }
 0x7bd   :  { %1730 = vsyncpa [#allocation9 + $0x1], 1 }
 0x7be   :  { %1731 = vsyncpa [#allocation4], 1 }
 0x7bf   :  { %1733 = vsyncpa [#allocation4 + $0x1], 1 }

</bundles_post_ra>
